<compile_context>
chip_gen: v6e
topology: v6e:2x2x1
jax: 0.10.0
libtpu: 0.0.40
codegen_flags: <defaults>
</compile_context>

<pallas_src>
import jax
import jax.numpy as jnp
from jax import lax
from jax.experimental import pallas as pl
from jax.experimental.pallas import tpu as pltpu


# --------------------------- host-side weight prep -------------------------- #

def build_band_weight(conv_w, w_out, in_stride):
    """Block-banded conv weight.

    conv_w : [Cout, Cin, 3, 3]   (PyTorch OIHW)
    Returns [3, Gw*Cin, w_out*Cout] with Gw = in_stride * w_out, so that for
    input rows laid out as lanes (in_stride*w_in)*Cin + ci and output lanes
    w*Cout + co, a single matmul per ky computes the 1x3 conv (with zero
    column padding) for that ky.
    """
    f32 = jnp.float32
    cout, cin, kh, kw = conv_w.shape
    mats = []
    for ky in range(kh):
        acc = jnp.zeros((in_stride * w_out * cin, w_out * cout), f32)
        for kx in range(kw):
            # sel[in_stride*w_in, w] = 1  iff  w_in == w + kx - 1  (else 0)
            base = jnp.eye(w_out, k=1 - kx, dtype=f32)           # [w_out, w_out]
            if in_stride > 1:
                expand = jnp.zeros((in_stride, 1), f32).at[0, 0].set(1.0)
                sel = jnp.kron(base, expand)                     # [Gw, w_out]
            else:
                sel = base
            acc = acc + jnp.kron(sel, conv_w[:, :, ky, kx].T.astype(f32))
        mats.append(acc)
    return jnp.stack(mats)                                       # [3, Gw*Cin, w_out*Cout]


def build_fc_weight(fc_w, hf, wf, c_last):
    """Permute fc weight to the kernel's feature layout.

    Feature layout produced by the kernel (per image): row i in [0, hf),
    lane (2*q)*c_last + c, q in [0, wf), c in [0, c_last)  -> PyTorch flat
    index c*(hf*wf) + i*wf + q.  Returns [hf, 2*wf*c_last, L] with zero rows
    at the odd (garbage) lane groups.
    """
    f32 = jnp.float32
    L = fc_w.shape[0]
    t = fc_w.reshape(L, c_last, hf, wf).transpose(2, 3, 1, 0).astype(f32)  # [hf, wf, C, L]
    z = jnp.zeros((hf, 2 * wf, c_last, L), f32).at[:, ::2].set(t)
    return z.reshape(hf, 2 * wf * c_last, L)


# ------------------------------ fused kernel -------------------------------- #

def _make_encoder_kernel(block_geom, hf, latent_dim):
    """block_geom: tuple of (H, Cout) per conv block (H = block input rows)."""
    nb = len(block_geom)

    def kernel(*refs):
        x_ref = refs[0]
        w_refs = [refs[1 + 2 * b] for b in range(nb)]
        bias_refs = [refs[2 + 2 * b] for b in range(nb)]
        fcw_ref = refs[1 + 2 * nb]
        fcb_ref = refs[2 + 2 * nb]
        out_ref = refs[3 + 2 * nb]
        scratch = refs[4 + 2 * nb:]
        a_refs = list(scratch[:nb - 1])            # row-padded inputs, blocks 1..
        y_refs = list(scratch[nb - 1:2 * nb - 1])  # conv+ReLU output per block

        cur = None                                 # pooled value from prev block
        for b, (H, Cout) in enumerate(block_geom):
            Ho = H // 2

            # ---- three ky-shifted LHS slabs (row padding via zero rows).
            if b == 0:
                lhs = [x_ref[0, ky:ky + H, :] for ky in range(3)]
            else:
                a = a_refs[b - 1]
                a[...] = jnp.zeros_like(a)         # zeroed pad rows (each step)
                a[1:H + 1, :] = cur
                lhs = [a[ky:ky + H, :] for ky in range(3)]

            # ---- conv 3x3 = 3 band matmuls, fused bias + ReLU.
            acc = jnp.dot(lhs[0], w_refs[b][0], preferred_element_type=jnp.float32)
            acc = acc + jnp.dot(lhs[1], w_refs[b][1], preferred_element_type=jnp.float32)
            acc = acc + jnp.dot(lhs[2], w_refs[b][2], preferred_element_type=jnp.float32)
            y = jnp.maximum(acc + bias_refs[b][...], 0.0)        # [H, W*Cout]

            # ---- maxpool 2x2/2: row pair-max (strided reads) + lane pair-max.
            yr = y_refs[b]
            yr[...] = y
            ev = yr[pl.ds(0, Ho, stride=2), :]
            od = yr[pl.ds(1, Ho, stride=2), :]
            rm = jnp.maximum(ev, od)                             # [Ho, W*Cout]
            sh = jnp.concatenate([rm[:, Cout:], rm[:, :Cout]], axis=-1)
            cur = jnp.maximum(rm, sh)      # data at even W-groups; odd = garbage

        # ---- flatten (folded into fc weight layout) + final linear.
        out = fcb_ref[...]                                        # [1, L]
        for i in range(hf):
            out = out + jnp.dot(cur[i:i + 1, :], fcw_ref[i],
                                preferred_element_type=jnp.float32)
        out_ref[0] = out

    return kernel


# ------------------------------ host wrapper -------------------------------- #

def encoder_forward_pallas(x_nchw, conv_params, fc_w, fc_b):
    f32 = jnp.float32
    N, C0, H0, W0 = x_nchw.shape
    nb = len(conv_params)
    L = fc_w.shape[0]

    # Static per-block geometry (H, W, Cin, Cout).
    dims = []
    H, W, C = H0, W0, C0
    for (w, _) in conv_params:
        assert H % 2 == 0 and W % 2 == 0, "even spatial sizes assumed (pool 2x2/2)"
        dims.append((H, W, C, w.shape[0]))
        H, W, C = H // 2, W // 2, w.shape[0]
    Hf, Wf, C_last = H, W, C
    assert fc_w.shape[1] == C_last * Hf * Wf

    # ---- input: NCHW -> per image [H0+2, W0*C0] lane-folded, zero pad rows.
    xt = jnp.transpose(x_nchw, (0, 2, 3, 1)).astype(f32).reshape(N, H0, W0 * C0)
    xin = jnp.pad(xt, ((0, 0), (1, 1), (0, 0)))                  # [N, H0+2, W0*C0]

    inputs = [xin]
    for b_i, (w, bb) in enumerate(conv_params):
        Hb, Wb, Cin, Cout = dims[b_i]
        stride = 1 if b_i == 0 else 2
        inputs.append(build_band_weight(w, Wb, stride))          # [3, K_b, Wb*Cout]
        inputs.append(jnp.tile(bb.astype(f32), Wb).reshape(1, Wb * Cout))
    inputs.append(build_fc_weight(fc_w, Hf, Wf, C_last))         # [Hf, featW, L]
    inputs.append(fc_b.astype(f32).reshape(1, L))

    # ---- specs.
    def const_map(ndim):
        return lambda n: (0,) * ndim

    in_specs = [pl.BlockSpec((1, H0 + 2, W0 * C0), lambda n: (n, 0, 0))]
    for a in inputs[1:]:
        in_specs.append(pl.BlockSpec(a.shape, const_map(a.ndim)))
    out_specs = pl.BlockSpec((1, 1, L), lambda n: (n, 0, 0))

    # ---- VMEM scratch (tiny; all intermediates stay on-chip).
    scratch = []
    for b_i in range(1, nb):
        width_in = dims[b_i - 1][1] * dims[b_i - 1][3]           # prev conv width
        scratch.append(pltpu.VMEM((dims[b_i][0] + 2, width_in), f32))
    for (Hb, Wb, Cin, Cout) in dims:
        scratch.append(pltpu.VMEM((Hb, Wb * Cout), f32))

    block_geom = tuple((Hb, Cout) for (Hb, Wb, Cin, Cout) in dims)
    kernel = _make_encoder_kernel(block_geom, Hf, L)

    # ---- advisory cost estimate.
    flops = 0
    width_in = W0 * C0
    for (Hb, Wb, Cin, Cout) in dims:
        flops += N * 2 * 3 * Hb * width_in * (Wb * Cout)
        width_in = Wb * Cout
    flops += N * 2 * Hf * width_in * L
    bytes_accessed = 4 * (int(xin.size) + sum(int(a.size) for a in inputs[1:]) + N * L)

    out = pl.pallas_call(
        kernel,
        out_shape=jax.ShapeDtypeStruct((N, 1, L), f32),
        grid=(N,),
        in_specs=in_specs,
        out_specs=out_specs,
        scratch_shapes=scratch,
        compiler_params=pltpu.CompilerParams(dimension_semantics=("parallel",)),
        cost_estimate=pl.CostEstimate(flops=flops, transcendentals=0,
                                      bytes_accessed=bytes_accessed),
    )(*inputs)
    return out.reshape(N, L)


# ------------------------- pure-JAX reference model ------------------------- #

def encoder_forward_ref(x_nchw, conv_params, fc_w, fc_b):
    x = x_nchw
    for (w, b) in conv_params:
        x = lax.conv_general_dilated(
            x, w, window_strides=(1, 1), padding=((1, 1), (1, 1)),
            dimension_numbers=("NCHW", "OIHW", "NCHW"))
        x = jnp.maximum(x + b[None, :, None, None], 0.0)
        x = lax.reduce_window(x, -jnp.inf, lax.max,
                              window_dimensions=(1, 1, 2, 2),
                              window_strides=(1, 1, 2, 2), padding="VALID")
    x = x.reshape(x.shape[0], -1)
    return x @ fc_w.T + fc_b


# ----------------------------------- main ------------------------------------ #

if __name__ == "__main__":
    input_size = (16, 16)
    channels = [4, 8, 16]          # channels[0] = input channels
    latent_dim = 32
    batch = 2

    key = jax.random.PRNGKey(0)
    keys = jax.random.split(key, 2 * (len(channels) - 1) + 3)

    conv_params = []
    kidx = 0
    for i in range(1, len(channels)):
        w = 0.1 * jax.random.normal(
            keys[kidx], (channels[i], channels[i - 1], 3, 3), jnp.float32)
        b = 0.1 * jax.random.normal(keys[kidx + 1], (channels[i],), jnp.float32)
        conv_params.append((w, b))
        kidx += 2

    h_final = input_size[0] // (2 ** (len(channels) - 1))
    w_final = input_size[1] // (2 ** (len(channels) - 1))
    feat_dim = channels[-1] * h_final * w_final
    fc_w = 0.1 * jax.random.normal(keys[kidx], (latent_dim, feat_dim), jnp.float32)
    fc_b = 0.1 * jax.random.normal(keys[kidx + 1], (latent_dim,), jnp.float32)

    x = jax.random.normal(keys[kidx + 2],
                          (batch, channels[0], input_size[0], input_size[1]),
                          jnp.float32)

    fwd = jax.jit(encoder_forward_pallas)
    out = fwd(x, conv_params, fc_w, fc_b)
    out = jax.block_until_ready(out)

    ref = encoder_forward_ref(x, conv_params, fc_w, fc_b)
    assert out.shape == (batch, latent_dim), out.shape
    assert jnp.allclose(out, ref, atol=2e-4, rtol=2e-4), \
        f"max abs diff {jnp.max(jnp.abs(out - ref))}"

    print("KERNEL_OK")
</pallas_src>

<mosaic_0001>
module attributes {stable_mosaic.version = 11 : i64} {
  func.func @kernel(%arg0: i32, %arg1: memref<1x18x64xf32, #tpu.memory_space<vmem>>, %arg2: memref<3x64x128xf32, #tpu.memory_space<vmem>>, %arg3: memref<1x128xf32, #tpu.memory_space<vmem>>, %arg4: memref<3x128x128xf32, #tpu.memory_space<vmem>>, %arg5: memref<1x128xf32, #tpu.memory_space<vmem>>, %arg6: memref<4x128x32xf32, #tpu.memory_space<vmem>>, %arg7: memref<1x32xf32, #tpu.memory_space<vmem>>, %arg8: memref<1x1x32xf32, #tpu.memory_space<vmem>>, %arg9: memref<10x128xf32, #tpu.memory_space<vmem>>, %arg10: memref<16x128xf32, #tpu.memory_space<vmem>>, %arg11: memref<8x128xf32, #tpu.memory_space<vmem>>) attributes {dimension_semantics = [#tpu.dimension_semantics<parallel>], iteration_bounds = array<i64: 2>, scalar_prefetch = 0 : i64, scratch_operands = 3 : i64, tpu.core_type = #tpu.core_type<tc>, window_params = [{transform_indices = @transform_0, window_bounds = array<i64: 1, 18, 64>}, {pipeline_mode = #tpu.pipeline_mode<synchronous>, transform_indices = @transform_1, window_bounds = array<i64: 3, 64, 128>}, {pipeline_mode = #tpu.pipeline_mode<synchronous>, transform_indices = @transform_2, window_bounds = array<i64: 1, 128>}, {pipeline_mode = #tpu.pipeline_mode<synchronous>, transform_indices = @transform_3, window_bounds = array<i64: 3, 128, 128>}, {pipeline_mode = #tpu.pipeline_mode<synchronous>, transform_indices = @transform_4, window_bounds = array<i64: 1, 128>}, {pipeline_mode = #tpu.pipeline_mode<synchronous>, transform_indices = @transform_5, window_bounds = array<i64: 4, 128, 32>}, {pipeline_mode = #tpu.pipeline_mode<synchronous>, transform_indices = @transform_6, window_bounds = array<i64: 1, 32>}, {transform_indices = @transform_7, window_bounds = array<i64: 1, 1, 32>}]} {
    %c0 = arith.constant 0 : index
    %c0_0 = arith.constant 0 : index
    %c0_1 = arith.constant 0 : index
    %0 = vector.load %arg1[%c0, %c0_0, %c0_1] : memref<1x18x64xf32, #tpu.memory_space<vmem>>, vector<1x16x64xf32>
    %1 = vector.shape_cast %0 : vector<1x16x64xf32> to vector<16x64xf32>
    %c0_2 = arith.constant 0 : index
    %c1 = arith.constant 1 : index
    %c0_3 = arith.constant 0 : index
    %2 = vector.load %arg1[%c0_2, %c1, %c0_3] : memref<1x18x64xf32, #tpu.memory_space<vmem>>, vector<1x16x64xf32>
    %3 = vector.shape_cast %2 : vector<1x16x64xf32> to vector<16x64xf32>
    %c0_4 = arith.constant 0 : index
    %c2 = arith.constant 2 : index
    %c0_5 = arith.constant 0 : index
    %4 = vector.load %arg1[%c0_4, %c2, %c0_5] : memref<1x18x64xf32, #tpu.memory_space<vmem>>, vector<1x16x64xf32>
    %5 = vector.shape_cast %4 : vector<1x16x64xf32> to vector<16x64xf32>
    %c0_6 = arith.constant 0 : index
    %c0_7 = arith.constant 0 : index
    %c0_8 = arith.constant 0 : index
    %6 = vector.load %arg2[%c0_6, %c0_7, %c0_8] : memref<3x64x128xf32, #tpu.memory_space<vmem>>, vector<1x64x128xf32>
    %7 = vector.shape_cast %6 : vector<1x64x128xf32> to vector<64x128xf32>
    %cst = arith.constant dense<0.000000e+00> : vector<16x128xf32>
    %8 = tpu.matmul %1, %7, %cst {dimension_numbers = #tpu.dot_dimension_numbers<[1], [0], [0], [1], [0, 0, 1, 1], [], []>} : vector<16x64xf32>, vector<64x128xf32>, vector<16x128xf32> -> vector<16x128xf32>
    %c1_9 = arith.constant 1 : index
    %c0_10 = arith.constant 0 : index
    %c0_11 = arith.constant 0 : index
    %9 = vector.load %arg2[%c1_9, %c0_10, %c0_11] : memref<3x64x128xf32, #tpu.memory_space<vmem>>, vector<1x64x128xf32>
    %10 = vector.shape_cast %9 : vector<1x64x128xf32> to vector<64x128xf32>
    %cst_12 = arith.constant dense<0.000000e+00> : vector<16x128xf32>
    %11 = tpu.matmul %3, %10, %cst_12 {dimension_numbers = #tpu.dot_dimension_numbers<[1], [0], [0], [1], [0, 0, 1, 1], [], []>} : vector<16x64xf32>, vector<64x128xf32>, vector<16x128xf32> -> vector<16x128xf32>
    %12 = arith.addf %8, %11 : vector<16x128xf32>
    %c2_13 = arith.constant 2 : index
    %c0_14 = arith.constant 0 : index
    %c0_15 = arith.constant 0 : index
    %13 = vector.load %arg2[%c2_13, %c0_14, %c0_15] : memref<3x64x128xf32, #tpu.memory_space<vmem>>, vector<1x64x128xf32>
    %14 = vector.shape_cast %13 : vector<1x64x128xf32> to vector<64x128xf32>
    %cst_16 = arith.constant dense<0.000000e+00> : vector<16x128xf32>
    %15 = tpu.matmul %5, %14, %cst_16 {dimension_numbers = #tpu.dot_dimension_numbers<[1], [0], [0], [1], [0, 0, 1, 1], [], []>} : vector<16x64xf32>, vector<64x128xf32>, vector<16x128xf32> -> vector<16x128xf32>
    %16 = arith.addf %12, %15 : vector<16x128xf32>
    %c0_17 = arith.constant 0 : index
    %c0_18 = arith.constant 0 : index
    %17 = vector.load %arg3[%c0_17, %c0_18] : memref<1x128xf32, #tpu.memory_space<vmem>>, vector<1x128xf32>
    %18 = vector.broadcast %17 : vector<1x128xf32> to vector<16x128xf32>
    %19 = arith.addf %16, %18 : vector<16x128xf32>
    %cst_19 = arith.constant 0.000000e+00 : f32
    %20 = vector.broadcast %cst_19 : f32 to vector<16x128xf32>
    %21 = arith.maximumf %19, %20 : vector<16x128xf32>
    %c0_20 = arith.constant 0 : index
    %c0_21 = arith.constant 0 : index
    %22 = vector.load %arg10[%c0_20, %c0_21] : memref<16x128xf32, #tpu.memory_space<vmem>>, vector<16x128xf32>
    tpu.vector_store %arg10[%c0_20, %c0_21], %21 {strides = array<i32>} : memref<16x128xf32, #tpu.memory_space<vmem>>, vector<16x128xf32>,
    %c0_22 = arith.constant 0 : index
    %c0_23 = arith.constant 0 : index
    %23 = tpu.strided_load %arg10[%c0_22, %c0_23] {strides = array<i32: 2, 1>} : memref<16x128xf32, #tpu.memory_space<vmem>>, vector<8x128xf32>
    %c1_24 = arith.constant 1 : index
    %c0_25 = arith.constant 0 : index
    %24 = tpu.strided_load %arg10[%c1_24, %c0_25] {strides = array<i32: 2, 1>} : memref<16x128xf32, #tpu.memory_space<vmem>>, vector<8x128xf32>
    %25 = arith.maximumf %23, %24 : vector<8x128xf32>
    %26 = vector.extract_strided_slice %25 {offsets = [0, 8], sizes = [8, 120], strides = [1, 1]} : vector<8x128xf32> to vector<8x120xf32>
    %27 = vector.extract_strided_slice %25 {offsets = [0, 0], sizes = [8, 8], strides = [1, 1]} : vector<8x128xf32> to vector<8x8xf32>
    %28 = tpu.concatenate %26, %27 in 1 : vector<8x120xf32>, vector<8x8xf32> -> vector<8x128xf32>
    %29 = arith.maximumf %25, %28 : vector<8x128xf32>
    %cst_26 = arith.constant 0.000000e+00 : f32
    %30 = vector.broadcast %cst_26 : f32 to vector<10x128xf32>
    %c0_27 = arith.constant 0 : index
    %c0_28 = arith.constant 0 : index
    %31 = vector.load %arg9[%c0_27, %c0_28] : memref<10x128xf32, #tpu.memory_space<vmem>>, vector<10x128xf32>
    tpu.vector_store %arg9[%c0_27, %c0_28], %30 {strides = array<i32>} : memref<10x128xf32, #tpu.memory_space<vmem>>, vector<10x128xf32>,
    %c1_29 = arith.constant 1 : index
    %c0_30 = arith.constant 0 : index
    %32 = vector.load %arg9[%c1_29, %c0_30] : memref<10x128xf32, #tpu.memory_space<vmem>>, vector<8x128xf32>
    tpu.vector_store %arg9[%c1_29, %c0_30], %29 {strides = array<i32>} : memref<10x128xf32, #tpu.memory_space<vmem>>, vector<8x128xf32>,
    %c0_31 = arith.constant 0 : index
    %c0_32 = arith.constant 0 : index
    %33 = vector.load %arg9[%c0_31, %c0_32] : memref<10x128xf32, #tpu.memory_space<vmem>>, vector<8x128xf32>
    %c1_33 = arith.constant 1 : index
    %c0_34 = arith.constant 0 : index
    %34 = vector.load %arg9[%c1_33, %c0_34] : memref<10x128xf32, #tpu.memory_space<vmem>>, vector<8x128xf32>
    %c2_35 = arith.constant 2 : index
    %c0_36 = arith.constant 0 : index
    %35 = vector.load %arg9[%c2_35, %c0_36] : memref<10x128xf32, #tpu.memory_space<vmem>>, vector<8x128xf32>
    %c0_37 = arith.constant 0 : index
    %c0_38 = arith.constant 0 : index
    %c0_39 = arith.constant 0 : index
    %36 = vector.load %arg4[%c0_37, %c0_38, %c0_39] : memref<3x128x128xf32, #tpu.memory_space<vmem>>, vector<1x128x128xf32>
    %37 = vector.shape_cast %36 : vector<1x128x128xf32> to vector<128x128xf32>
    %cst_40 = arith.constant dense<0.000000e+00> : vector<8x128xf32>
    %38 = tpu.matmul %33, %37, %cst_40 {dimension_numbers = #tpu.dot_dimension_numbers<[1], [0], [0], [1], [0, 0, 1, 1], [], []>} : vector<8x128xf32>, vector<128x128xf32>, vector<8x128xf32> -> vector<8x128xf32>
    %c1_41 = arith.constant 1 : index
    %c0_42 = arith.constant 0 : index
    %c0_43 = arith.constant 0 : index
    %39 = vector.load %arg4[%c1_41, %c0_42, %c0_43] : memref<3x128x128xf32, #tpu.memory_space<vmem>>, vector<1x128x128xf32>
    %40 = vector.shape_cast %39 : vector<1x128x128xf32> to vector<128x128xf32>
    %cst_44 = arith.constant dense<0.000000e+00> : vector<8x128xf32>
    %41 = tpu.matmul %34, %40, %cst_44 {dimension_numbers = #tpu.dot_dimension_numbers<[1], [0], [0], [1], [0, 0, 1, 1], [], []>} : vector<8x128xf32>, vector<128x128xf32>, vector<8x128xf32> -> vector<8x128xf32>
    %42 = arith.addf %38, %41 : vector<8x128xf32>
    %c2_45 = arith.constant 2 : index
    %c0_46 = arith.constant 0 : index
    %c0_47 = arith.constant 0 : index
    %43 = vector.load %arg4[%c2_45, %c0_46, %c0_47] : memref<3x128x128xf32, #tpu.memory_space<vmem>>, vector<1x128x128xf32>
    %44 = vector.shape_cast %43 : vector<1x128x128xf32> to vector<128x128xf32>
    %cst_48 = arith.constant dense<0.000000e+00> : vector<8x128xf32>
    %45 = tpu.matmul %35, %44, %cst_48 {dimension_numbers = #tpu.dot_dimension_numbers<[1], [0], [0], [1], [0, 0, 1, 1], [], []>} : vector<8x128xf32>, vector<128x128xf32>, vector<8x128xf32> -> vector<8x128xf32>
    %46 = arith.addf %42, %45 : vector<8x128xf32>
    %c0_49 = arith.constant 0 : index
    %c0_50 = arith.constant 0 : index
    %47 = vector.load %arg5[%c0_49, %c0_50] : memref<1x128xf32, #tpu.memory_space<vmem>>, vector<1x128xf32>
    %48 = vector.broadcast %47 : vector<1x128xf32> to vector<8x128xf32>
    %49 = arith.addf %46, %48 : vector<8x128xf32>
    %cst_51 = arith.constant 0.000000e+00 : f32
    %50 = vector.broadcast %cst_51 : f32 to vector<8x128xf32>
    %51 = arith.maximumf %49, %50 : vector<8x128xf32>
    %c0_52 = arith.constant 0 : index
    %c0_53 = arith.constant 0 : index
    %52 = vector.load %arg11[%c0_52, %c0_53] : memref<8x128xf32, #tpu.memory_space<vmem>>, vector<8x128xf32>
    tpu.vector_store %arg11[%c0_52, %c0_53], %51 {strides = array<i32>} : memref<8x128xf32, #tpu.memory_space<vmem>>, vector<8x128xf32>,
    %c0_54 = arith.constant 0 : index
    %c0_55 = arith.constant 0 : index
    %53 = tpu.strided_load %arg11[%c0_54, %c0_55] {strides = array<i32: 2, 1>} : memref<8x128xf32, #tpu.memory_space<vmem>>, vector<4x128xf32>
    %c1_56 = arith.constant 1 : index
    %c0_57 = arith.constant 0 : index
    %54 = tpu.strided_load %arg11[%c1_56, %c0_57] {strides = array<i32: 2, 1>} : memref<8x128xf32, #tpu.memory_space<vmem>>, vector<4x128xf32>
    %55 = arith.maximumf %53, %54 : vector<4x128xf32>
    %56 = vector.extract_strided_slice %55 {offsets = [0, 16], sizes = [4, 112], strides = [1, 1]} : vector<4x128xf32> to vector<4x112xf32>
    %57 = vector.extract_strided_slice %55 {offsets = [0, 0], sizes = [4, 16], strides = [1, 1]} : vector<4x128xf32> to vector<4x16xf32>
    %58 = tpu.concatenate %56, %57 in 1 : vector<4x112xf32>, vector<4x16xf32> -> vector<4x128xf32>
    %59 = arith.maximumf %55, %58 : vector<4x128xf32>
    %c0_58 = arith.constant 0 : index
    %c0_59 = arith.constant 0 : index
    %60 = vector.load %arg7[%c0_58, %c0_59] : memref<1x32xf32, #tpu.memory_space<vmem>>, vector<1x32xf32>
    %61 = vector.extract_strided_slice %59 {offsets = [0, 0], sizes = [1, 128], strides = [1, 1]} : vector<4x128xf32> to vector<1x128xf32>
    %c0_60 = arith.constant 0 : index
    %c0_61 = arith.constant 0 : index
    %c0_62 = arith.constant 0 : index
    %62 = vector.load %arg6[%c0_60, %c0_61, %c0_62] : memref<4x128x32xf32, #tpu.memory_space<vmem>>, vector<1x128x32xf32>
    %63 = vector.shape_cast %62 : vector<1x128x32xf32> to vector<128x32xf32>
    %cst_63 = arith.constant dense<0.000000e+00> : vector<1x32xf32>
    %64 = tpu.matmul %61, %63, %cst_63 {dimension_numbers = #tpu.dot_dimension_numbers<[1], [0], [0], [1], [0, 0, 1, 1], [], []>} : vector<1x128xf32>, vector<128x32xf32>, vector<1x32xf32> -> vector<1x32xf32>
    %65 = arith.addf %60, %64 : vector<1x32xf32>
    %66 = vector.extract_strided_slice %59 {offsets = [1, 0], sizes = [1, 128], strides = [1, 1]} : vector<4x128xf32> to vector<1x128xf32>
    %c1_64 = arith.constant 1 : index
    %c0_65 = arith.constant 0 : index
    %c0_66 = arith.constant 0 : index
    %67 = vector.load %arg6[%c1_64, %c0_65, %c0_66] : memref<4x128x32xf32, #tpu.memory_space<vmem>>, vector<1x128x32xf32>
    %68 = vector.shape_cast %67 : vector<1x128x32xf32> to vector<128x32xf32>
    %cst_67 = arith.constant dense<0.000000e+00> : vector<1x32xf32>
    %69 = tpu.matmul %66, %68, %cst_67 {dimension_numbers = #tpu.dot_dimension_numbers<[1], [0], [0], [1], [0, 0, 1, 1], [], []>} : vector<1x128xf32>, vector<128x32xf32>, vector<1x32xf32> -> vector<1x32xf32>
    %70 = arith.addf %65, %69 : vector<1x32xf32>
    %71 = vector.extract_strided_slice %59 {offsets = [2, 0], sizes = [1, 128], strides = [1, 1]} : vector<4x128xf32> to vector<1x128xf32>
    %c2_68 = arith.constant 2 : index
    %c0_69 = arith.constant 0 : index
    %c0_70 = arith.constant 0 : index
    %72 = vector.load %arg6[%c2_68, %c0_69, %c0_70] : memref<4x128x32xf32, #tpu.memory_space<vmem>>, vector<1x128x32xf32>
    %73 = vector.shape_cast %72 : vector<1x128x32xf32> to vector<128x32xf32>
    %cst_71 = arith.constant dense<0.000000e+00> : vector<1x32xf32>
    %74 = tpu.matmul %71, %73, %cst_71 {dimension_numbers = #tpu.dot_dimension_numbers<[1], [0], [0], [1], [0, 0, 1, 1], [], []>} : vector<1x128xf32>, vector<128x32xf32>, vector<1x32xf32> -> vector<1x32xf32>
    %75 = arith.addf %70, %74 : vector<1x32xf32>
    %76 = vector.extract_strided_slice %59 {offsets = [3, 0], sizes = [1, 128], strides = [1, 1]} : vector<4x128xf32> to vector<1x128xf32>
    %c3 = arith.constant 3 : index
    %c0_72 = arith.constant 0 : index
    %c0_73 = arith.constant 0 : index
    %77 = vector.load %arg6[%c3, %c0_72, %c0_73] : memref<4x128x32xf32, #tpu.memory_space<vmem>>, vector<1x128x32xf32>
    %78 = vector.shape_cast %77 : vector<1x128x32xf32> to vector<128x32xf32>
    %cst_74 = arith.constant dense<0.000000e+00> : vector<1x32xf32>
    %79 = tpu.matmul %76, %78, %cst_74 {dimension_numbers = #tpu.dot_dimension_numbers<[1], [0], [0], [1], [0, 0, 1, 1], [], []>} : vector<1x128xf32>, vector<128x32xf32>, vector<1x32xf32> -> vector<1x32xf32>
    %80 = arith.addf %75, %79 : vector<1x32xf32>
    %c0_75 = arith.constant 0 : index
    %c0_76 = arith.constant 0 : index
    %c0_77 = arith.constant 0 : index
    %81 = vector.load %arg8[%c0_75, %c0_76, %c0_77] : memref<1x1x32xf32, #tpu.memory_space<vmem>>, vector<1x1x32xf32>
    %82 = vector.shape_cast %81 : vector<1x1x32xf32> to vector<1x32xf32>
    %83 = vector.shape_cast %80 : vector<1x32xf32> to vector<1x1x32xf32>
    tpu.vector_store %arg8[%c0_75, %c0_76, %c0_77], %83 {strides = array<i32>} : memref<1x1x32xf32, #tpu.memory_space<vmem>>, vector<1x1x32xf32>,
    return
  }
  func.func @transform_0(%arg0: i32) -> (i32, i32, i32) {
    %c0_i32 = arith.constant 0 : i32
    %c0_i32_0 = arith.constant 0 : i32
    %c0_i32_1 = arith.constant 0 : i32
    return %arg0, %c0_i32, %c0_i32_0 : i32, i32, i32
  }
  func.func @transform_1(%arg0: i32) -> (i32, i32, i32) {
    %c0_i32 = arith.constant 0 : i32
    %c0_i32_0 = arith.constant 0 : i32
    %c0_i32_1 = arith.constant 0 : i32
    %c0_i32_2 = arith.constant 0 : i32
    return %c0_i32, %c0_i32_0, %c0_i32_1 : i32, i32, i32
  }
  func.func @transform_2(%arg0: i32) -> (i32, i32) {
    %c0_i32 = arith.constant 0 : i32
    %c0_i32_0 = arith.constant 0 : i32
    %c0_i32_1 = arith.constant 0 : i32
    return %c0_i32, %c0_i32_0 : i32, i32
  }
  func.func @transform_3(%arg0: i32) -> (i32, i32, i32) {
    %c0_i32 = arith.constant 0 : i32
    %c0_i32_0 = arith.constant 0 : i32
    %c0_i32_1 = arith.constant 0 : i32
    %c0_i32_2 = arith.constant 0 : i32
    return %c0_i32, %c0_i32_0, %c0_i32_1 : i32, i32, i32
  }
  func.func @transform_4(%arg0: i32) -> (i32, i32) {
    %c0_i32 = arith.constant 0 : i32
    %c0_i32_0 = arith.constant 0 : i32
    %c0_i32_1 = arith.constant 0 : i32
    return %c0_i32, %c0_i32_0 : i32, i32
  }
  func.func @transform_5(%arg0: i32) -> (i32, i32, i32) {
    %c0_i32 = arith.constant 0 : i32
    %c0_i32_0 = arith.constant 0 : i32
    %c0_i32_1 = arith.constant 0 : i32
    %c0_i32_2 = arith.constant 0 : i32
    return %c0_i32, %c0_i32_0, %c0_i32_1 : i32, i32, i32
  }
  func.func @transform_6(%arg0: i32) -> (i32, i32) {
    %c0_i32 = arith.constant 0 : i32
    %c0_i32_0 = arith.constant 0 : i32
    %c0_i32_1 = arith.constant 0 : i32
    return %c0_i32, %c0_i32_0 : i32, i32
  }
  func.func @transform_7(%arg0: i32) -> (i32, i32, i32) {
    %c0_i32 = arith.constant 0 : i32
    %c0_i32_0 = arith.constant 0 : i32
    %c0_i32_1 = arith.constant 0 : i32
    return %arg0, %c0_i32, %c0_i32_0 : i32, i32, i32
  }
}

</mosaic_0001>

<bundles_post_ra>
// kernel: tile.13
= control target key start
LH: loop header
LB: loop body
LE: loop exit
PB: predicated region body
PF: predicated region fallthrough
CT: control target
= control target key end

     0   :  { %s28_s0 = inlined_call_operand.vmem [shape: f32[8], index: 0, kind: input, shape index: {}]   ;;  %s29_s1 = inlined_call_operand.vmem [shape: f32[16,8], index: 1, kind: output, shape index: {}]  }
   0x1   :  { %v4_v0 = vld [vmem:[%s28_s0] ss:$0 sm:$0xff] }
   0x2   :  { %5 = vst [vmem:[%s29_s1] sm:$0xff] %v4_v0  ;;  %8 = vst [vmem:[%s29_s1 + $0x8] sm:$0xff] %v4_v0 }

// kernel: tile.14
= control target key start
LH: loop header
LB: loop body
LE: loop exit
PB: predicated region body
PF: predicated region fallthrough
CT: control target
= control target key end

     0   :  { %s133_s10 = smov 120   ;;  %s134_s11 = smov 104   ;;  %vm3_vm0 = vcmask 64512   ;;  %vm9_vm1 = vcmask 1048512   ;;  %vm15_vm2 = vcmask 982912   ;;  %vm21_vm3 = vcmask 917312   ;;  %s209_s0 = inlined_call_operand.vmem [shape: f32[16,8], index: 0, kind: input, shape index: {}]   ;;  %s210_s1 = inlined_call_operand.vmem [shape: f32[1,128], index: 1, kind: output, shape index: {}]  }
   0x1   :  { %v103_v0 = vld [vmem:[%s209_s0 + $0xf] sm:$0x1]   ;;  %v105_v1 = vld [vmem:[%s209_s0 + $0xd] sm:$0x1]   ;;  %v104_v2 = vld [vmem:[%s209_s0 + $0xe] sm:$0x1]  }
   0x2   :  { %7 = vrot.lane.b32.xlu0 %v103_v0, %s133_s10  ;;  %19 = vrot.lane.b32.xlu1 %v105_v1, %s134_s11  ;;  %v106_v3 = vld [vmem:[%s209_s0 + $0xc] sm:$0x1]   ;;  %s135_s16 = smov 112   ;;  %s136_s17 = smov 96   ;;  %v107_v4 = vld [vmem:[%s209_s0 + $0xb] sm:$0x1]  }
   0x3   :  { %v108_v5 = vld [vmem:[%s209_s0 + $0xa] sm:$0x1]   ;;  %v2_v6 = vld [vmem:[%s209_s0] sm:$0x1]   ;;  %s137_s24 = smov 88   ;;  %s138_s25 = smov 80  }
   0x4   :  { %4 = vst.msk [vmem:[#allocation0] sm:$0x1] %vm3_vm0, %v2_v6   ;;  %v109_v7 = vld [vmem:[%s209_s0 + $0x9] sm:$0x1]   ;;  %v110_v8 = vld [vmem:[%s209_s0 + $0x8] sm:$0x1]  }
   0x5   :  { %s139_s30 = smov 72   ;;  %s140_s2 = smov 64   ;;  %v111_v9 = vld [vmem:[%s209_s0 + $0x7] sm:$0x1]   ;;  %v112_v10 = vld [vmem:[%s209_s0 + $0x6] sm:$0x1]  }
   0x6   :  { %13 = vrot.lane.b32.xlu0 %v104_v2, %s135_s16  ;;  %25 = vrot.lane.b32.xlu1 %v106_v3, %s136_s17  ;;  %s141_s7 = smov 56   ;;  %s142_s8 = smov 48   ;;  %v113_v11 = vld [vmem:[%s209_s0 + $0x5] sm:$0x1]   ;;  %v114_v12 = vld [vmem:[%s209_s0 + $0x4] sm:$0x1]  }
   0x7   :  { %s143_s13 = smov 40   ;;  %s144_s14 = smov 32   ;;  %v115_v13 = vld [vmem:[%s209_s0 + $0x3] sm:$0x1]   ;;  %v116_v14 = vld [vmem:[%s209_s0 + $0x2] sm:$0x1]  }
   0x8   :  { %s145_s19 = smov 24   ;;  %s146_s20 = smov 16   ;;  %v117_v15 = vld [vmem:[%s209_s0 + $0x1] sm:$0x1]   ;;  %vm27_vm4 = vcmask 851712   ;;  %vm33_vm5 = vcmask 786112  }
   0x9   :  { %s147_s0 = smov 8   ;;  %vm39_vm6 = vcmask 720512   ;;  %vm45_vm7 = vcmask 654912   ;;  %vm51_vm8 = vcmask 589312   ;;  %vm57_vm9 = vcmask 523712  }
   0xa   :  { %31 = vrot.lane.b32.xlu0 %v107_v4, %s137_s24  ;;  %37 = vrot.lane.b32.xlu1 %v108_v5, %s138_s25  ;;  %vm63_vm10 = vcmask 458112   ;;  %vm69_vm11 = vcmask 392512   ;;  %vm75_vm12 = vcmask 326912   ;;  %vm81_vm13 = vcmask 261312  }
   0xb   :  { %vm87_vm14 = vcmask 195712   ;;  %vm93_vm15 = vcmask 130112  }
   0xe   :  { %43 = vrot.lane.b32.xlu0 %v109_v7, %s139_s30  ;;  %49 = vrot.lane.b32.xlu1 %v110_v8, %s140_s2 }
  0x12   :  { %55 = vrot.lane.b32.xlu0 %v111_v9, %s141_s7  ;;  %61 = vrot.lane.b32.xlu1 %v112_v10, %s142_s8 }
  0x16   :  { %67 = vrot.lane.b32.xlu0 %v113_v11, %s143_s13  ;;  %73 = vrot.lane.b32.xlu1 %v114_v12, %s144_s14 }
  0x1a   :  { %79 = vrot.lane.b32.xlu0 %v115_v13, %s145_s19  ;;  %85 = vrot.lane.b32.xlu1 %v116_v14, %s146_s20 }
  0x1e   :  { %91 = vrot.lane.b32.xlu0 %v117_v15, %s147_s0 }
  0x74   :  { %v8_v16 = vpop.permute.xlu0 %7   ;;  %v20_v17 = vpop.permute.xlu1 %19  }
  0x75   :  { %10 = vst.msk [vmem:[#allocation0] sm:$0x1] %vm9_vm1, %v8_v16  }
  0x78   :  { %v14_v18 = vpop.permute.xlu0 %13   ;;  %v26_v19 = vpop.permute.xlu1 %25  }
  0x79   :  { %16 = vst.msk [vmem:[#allocation0] sm:$0x1] %vm15_vm2, %v14_v18  }
  0x7a   :  { %22 = vst.msk [vmem:[#allocation0] sm:$0x1] %vm21_vm3, %v20_v17  }
  0x7b   :  { %28 = vst.msk [vmem:[#allocation0] sm:$0x1] %vm27_vm4, %v26_v19  }
  0x7c   :  { %v32_v20 = vpop.permute.xlu0 %31   ;;  %v38_v21 = vpop.permute.xlu1 %37  }
  0x7d   :  { %34 = vst.msk [vmem:[#allocation0] sm:$0x1] %vm33_vm5, %v32_v20  }
  0x7e   :  { %40 = vst.msk [vmem:[#allocation0] sm:$0x1] %vm39_vm6, %v38_v21  }
  0x80   :  { %v44_v22 = vpop.permute.xlu0 %43   ;;  %v50_v23 = vpop.permute.xlu1 %49  }
  0x81   :  { %46 = vst.msk [vmem:[#allocation0] sm:$0x1] %vm45_vm7, %v44_v22  }
  0x82   :  { %52 = vst.msk [vmem:[#allocation0] sm:$0x1] %vm51_vm8, %v50_v23  }
  0x84   :  { %v56_v24 = vpop.permute.xlu0 %55   ;;  %v62_v25 = vpop.permute.xlu1 %61  }
  0x85   :  { %58 = vst.msk [vmem:[#allocation0] sm:$0x1] %vm57_vm9, %v56_v24  }
  0x86   :  { %64 = vst.msk [vmem:[#allocation0] sm:$0x1] %vm63_vm10, %v62_v25  }
  0x88   :  { %v68_v26 = vpop.permute.xlu0 %67   ;;  %v74_v27 = vpop.permute.xlu1 %73  }
  0x89   :  { %70 = vst.msk [vmem:[#allocation0] sm:$0x1] %vm69_vm11, %v68_v26  }
  0x8a   :  { %76 = vst.msk [vmem:[#allocation0] sm:$0x1] %vm75_vm12, %v74_v27  }
  0x8c   :  { %v80_v28 = vpop.permute.xlu0 %79   ;;  %v86_v29 = vpop.permute.xlu1 %85  }
  0x8d   :  { %82 = vst.msk [vmem:[#allocation0] sm:$0x1] %vm81_vm13, %v80_v28  }
  0x8e   :  { %88 = vst.msk [vmem:[#allocation0] sm:$0x1] %vm87_vm14, %v86_v29  }
  0x90   :  { %v92_v30 = vpop.permute.xlu0 %91  }
  0x91   :  { %94 = vst.msk [vmem:[#allocation0] sm:$0x1] %vm93_vm15, %v92_v30  }
  0x98   :  { %v99_v31 = vld [vmem:[#allocation0] sm:$0x1] }
  0x99   :  { %102 = vst [vmem:[%s210_s1] sm:$0x1] %v99_v31 }

// kernel: tile.18
= control target key start
LH: loop header
LB: loop body
LE: loop exit
PB: predicated region body
PF: predicated region fallthrough
CT: control target
= control target key end

     0   :  { %s22_s0 = inlined_call_operand.vmem [shape: f32[16], index: 0, kind: input, shape index: {}]   ;;  %s23_s1 = inlined_call_operand.vmem [shape: f32[8,16], index: 1, kind: output, shape index: {}]  }
   0x1   :  { %v4_v0 = vld [vmem:[%s22_s0] ss:$0 sm:$0xff] }
   0x2   :  { %5 = vst [vmem:[%s23_s1] sm:$0xff] %v4_v0 }

// kernel: tile.19
= control target key start
LH: loop header
LB: loop body
LE: loop exit
PB: predicated region body
PF: predicated region fallthrough
CT: control target
= control target key end

     0   :  { %s69_s10 = smov 112   ;;  %s70_s11 = smov 80   ;;  %vm3_vm0 = vcmask 130048   ;;  %vm9_vm1 = vcmask 1048448   ;;  %vm15_vm2 = vcmask 917248   ;;  %vm21_vm3 = vcmask 786048   ;;  %s113_s0 = inlined_call_operand.vmem [shape: f32[8,16], index: 0, kind: input, shape index: {}]   ;;  %s114_s1 = inlined_call_operand.vmem [shape: f32[1,128], index: 1, kind: output, shape index: {}]  }
   0x1   :  { %v55_v0 = vld [vmem:[%s113_s0 + $0x7] sm:$0x1]   ;;  %v57_v1 = vld [vmem:[%s113_s0 + $0x5] sm:$0x1]   ;;  %v56_v2 = vld [vmem:[%s113_s0 + $0x6] sm:$0x1]  }
   0x2   :  { %7 = vrot.lane.b32.xlu0 %v55_v0, %s69_s10  ;;  %19 = vrot.lane.b32.xlu1 %v57_v1, %s70_s11  ;;  %v58_v3 = vld [vmem:[%s113_s0 + $0x4] sm:$0x1]   ;;  %v2_v4 = vld [vmem:[%s113_s0] sm:$0x1]   ;;  %s71_s18 = smov 96   ;;  %s72_s19 = smov 64  }
   0x3   :  { %4 = vst.msk [vmem:[#allocation0] sm:$0x1] %vm3_vm0, %v2_v4   ;;  %v59_v5 = vld [vmem:[%s113_s0 + $0x3] sm:$0x1]   ;;  %v60_v6 = vld [vmem:[%s113_s0 + $0x2] sm:$0x1]  }
   0x4   :  { %s73_s24 = smov 48   ;;  %s74_s25 = smov 32   ;;  %v61_v7 = vld [vmem:[%s113_s0 + $0x1] sm:$0x1]   ;;  %vm27_vm4 = vcmask 654848   ;;  %vm33_vm5 = vcmask 523648  }
   0x5   :  { %s75_s0 = smov 16   ;;  %vm39_vm6 = vcmask 392448   ;;  %vm45_vm7 = vcmask 261248  }
   0x6   :  { %13 = vrot.lane.b32.xlu0 %v56_v2, %s71_s18  ;;  %25 = vrot.lane.b32.xlu1 %v58_v3, %s72_s19 }
   0xa   :  { %31 = vrot.lane.b32.xlu0 %v59_v5, %s73_s24  ;;  %37 = vrot.lane.b32.xlu1 %v60_v6, %s74_s25 }
   0xe   :  { %43 = vrot.lane.b32.xlu0 %v61_v7, %s75_s0 }
  0x74   :  { %v8_v8 = vpop.permute.xlu0 %7   ;;  %v20_v9 = vpop.permute.xlu1 %19  }
  0x75   :  { %10 = vst.msk [vmem:[#allocation0] sm:$0x1] %vm9_vm1, %v8_v8  }
  0x78   :  { %v14_v10 = vpop.permute.xlu0 %13   ;;  %v26_v11 = vpop.permute.xlu1 %25  }
  0x79   :  { %16 = vst.msk [vmem:[#allocation0] sm:$0x1] %vm15_vm2, %v14_v10  }
  0x7a   :  { %22 = vst.msk [vmem:[#allocation0] sm:$0x1] %vm21_vm3, %v20_v9  }
  0x7b   :  { %28 = vst.msk [vmem:[#allocation0] sm:$0x1] %vm27_vm4, %v26_v11  }
  0x7c   :  { %v32_v12 = vpop.permute.xlu0 %31   ;;  %v38_v13 = vpop.permute.xlu1 %37  }
  0x7d   :  { %34 = vst.msk [vmem:[#allocation0] sm:$0x1] %vm33_vm5, %v32_v12  }
  0x7e   :  { %40 = vst.msk [vmem:[#allocation0] sm:$0x1] %vm39_vm6, %v38_v13  }
  0x80   :  { %v44_v14 = vpop.permute.xlu0 %43  }
  0x81   :  { %46 = vst.msk [vmem:[#allocation0] sm:$0x1] %vm45_vm7, %v44_v14  }
  0x88   :  { %v51_v15 = vld [vmem:[#allocation0] sm:$0x1] }
  0x89   :  { %54 = vst [vmem:[%s114_s1] sm:$0x1] %v51_v15 }

// kernel: encoder_forward_pallas.1
= control target key start
LH: loop header
LB: loop body
LE: loop exit
PB: predicated region body
PF: predicated region fallthrough
CT: control target
= control target key end

     0   :  { %12 = vsyncpa [#allocation6], 0  ;;  %s2663_s0 = inlined_call_operand.vmem [shape: f32[2,18,64], index: 0, kind: input, shape index: {}]   ;;  %s2664_s1 = inlined_call_operand.vmem [shape: f32[3,64,128], index: 1, kind: input, shape index: {}]   ;;  %s2665_s2 = inlined_call_operand.vmem [shape: f32[1,128], index: 2, kind: input, shape index: {}]   ;;  %s2666_s3 = inlined_call_operand.vmem [shape: f32[3,128,128], index: 3, kind: input, shape index: {}]   ;;  %s2667_s4 = inlined_call_operand.vmem [shape: f32[1,128], index: 4, kind: input, shape index: {}]   ;;  %s2668_s5 = inlined_call_operand.vmem [shape: f32[4,128,32], index: 5, kind: input, shape index: {}]   ;;  %s2669_s6 = inlined_call_operand.vmem [shape: f32[1,32], index: 6, kind: input, shape index: {}]   ;;  %s2670_s7 = inlined_call_operand.hbm [shape: f32[2,1,32], index: 7, kind: output, shape index: {}]  }
   0x1   :  { %14 = vsyncpa [#allocation6 + $0x1], 0  ;;  %s2005_s24 = smov 0   ;;  %s2007_s25 = smov 0  }
   0x2   :  { %s2009_s26 = smov 0   ;;  %s2011_s27 = smov 0  }
   0x3 LB: > { %s2026_s28 = sadd.s32 4294967295, %s1958_s27   ;;  %s1291_s29 = sadd.s32 4294967294, %s1958_s27   ;;  %s1958_s27 = sphi %s2011_s27, %s2676_s27   ;;  %s1954_s26 = sphi %s2009_s26, %s2675_s26   ;;  %s1950_s25 = sphi %s2007_s25, %s2674_s25   ;;  %s1946_s24 = sphi %s2005_s24, %s2673_s24  }
   0x4   : > { %s2030_s30 = sadd.s32 1, %s1958_s27   ;;  %s179_s8 = sadd.s32 1, %s1954_s26 }
   0x5   : > { %s176_s9 = ssub.s32 %s1958_s27, %s2030_s30  ;;  %p189_p0 = scmp.ne.s32.totalorder %s1954_s26, %s1950_s25 }
   0x6   : > { %p177_p1 = scmp.eq.s32.totalorder %s176_s9, 0  ;;  %p190_p2 = scmp.eq.s32.totalorder %s2026_s28, 1 }
   0x7   : > { %p195_p3 = scmp.ne.s32.totalorder %s1950_s25, %s1946_s24  ;;  %p196_p4 = scmp.eq.s32.totalorder %s1291_s29, 1 }
   0x8   : > { %s2041_s10 = scalar_select %p177_p1, %s1954_s26, %s179_s8  }
   0x9   : > { %p2043_p5 = por %p190_p2, %p189_p0  ;;  %p2047_p6 = por %p196_p4, %p195_p3 }
   0xa   : > { %p1294_p7 = scmp.ge.s32.totalorder %s1958_s27, 1  ;;  %p240_p8 = scmp.lt.s32.totalorder %s1958_s27, 3 }
   0xc   : > { %p241_p9 = pnand %p1294_p7, %p240_p8 }
   0xd   : > { %p271_p10 = scmp.lt.s32.totalorder (!%p241_p9), %s2026_s28, 1  ;;  %s1962_s22 = smov (!%p241_p9), 120  }
   0xe   : > { %244 = sbr.rel (%p241_p9) target bundleno = 982 (0x3d6), region = 48  ;;  %s269_s19 = sand.u32 (!%p241_p9), 1, %s1950_s25  }
   0xf   : > { %s1400_s21 = sshll.u32 (!%p241_p9), %s2026_s28, 4  ;;  %s1224_s13 = scalar_lea.sflag (!%p241_p9), [#allocation6], %s269_s19 }
  0x10   : > { %s2628_s9 = scalar_lea.hbm (!%p241_p9), %s2670_s7, %s1400_s21 }
  0x13   : > { %v1303_v0 = vld [vmem:[%s2664_s1 + $0x78] sm:$0xff]  ;;  %v1302_v2 = vld [vmem:[%s2664_s1 + $0x70] sm:$0xff]  ;;  %v1301_v4 = vld [vmem:[%s2664_s1 + $0x68] sm:$0xff]  ;;  %s272_s8 = scalar_select %p271_p10, %s2026_s28, 1  ;;  %vm299_vm0 = vcmask 523264   ;;  %v1960_v32 = vmov 0.0  }
  0x14   : > { %v289_v1 = vld [vmem:[%s2664_s1 + $0x38] sm:$0xff]  ;;  %1552 = vmatprep.subr.mxu0 %v1303_v0  ;;  %v288_v3 = vld [vmem:[%s2664_s1 + $0x30] sm:$0xff]  ;;  %v287_v5 = vld [vmem:[%s2664_s1 + $0x28] sm:$0xff]  ;;  %576 = vst [vmem:[#allocation2] sm:$0xff] %v1960_v32  ;;  %vm1961_vm1 = vmmov 0   ;;  %vm1221_vm2 = vcmask 253952  }
  0x15   : > { %1571 = vmatprep.subr.mxu1 %v289_v1  ;;  %1553 = vmatpush3.msra.mxu0 %v1303_v0  ;;  %v1300_v6 = vld [vmem:[%s2664_s1 + $0x60] sm:$0xff]  ;;  %v1299_v8 = vld [vmem:[%s2664_s1 + $0x58] sm:$0xff]  ;;  %s1854_s20 = smul.u32 24, %s272_s8  ;;  %v1298_v10 = vld [vmem:[%s2664_s1 + $0x50] sm:$0xff]  ;;  %577 = vst [vmem:[#allocation2 + $0x8] sm:$0x3] %v1960_v32 }
  0x16   : > { %1572 = vmatpush3.msra.mxu1 %v289_v1  ;;  %1554 = vmatprep.subr.mxu0 %v1302_v2  ;;  %v286_v7 = vld [vmem:[%s2664_s1 + $0x20] sm:$0xff]  ;;  %v285_v9 = vld [vmem:[%s2664_s1 + $0x18] sm:$0xff]  ;;  %v284_v11 = vld [vmem:[%s2664_s1 + $0x10] sm:$0xff]  ;;  %s1964_s28 = smov [#allocation5]  }
  0x17   : > { %1573 = vmatprep.subr.mxu1 %v288_v3  ;;  %1555 = vmatpush3.msra.mxu0 %v1302_v2  ;;  %v1297_v12 = vld [vmem:[%s2664_s1 + $0x48] sm:$0xff]  ;;  %s2100_s17 = scalar_lea.vmem %s2663_s0, %s1854_s20  ;;  %v1296_v14 = vld [vmem:[%s2664_s1 + $0x40] sm:$0xff]  ;;  %v1315_v20 = vld [vmem:[%s2664_s1 + $0xb8] sm:$0xff]  ;;  %s1963_s20 = smov 112  }
  0x18   : > { %1574 = vmatpush3.msra.mxu1 %v288_v3  ;;  %1556 = vmatprep.subr.mxu0 %v1301_v4  ;;  %v283_v13 = vld [vmem:[%s2664_s1 + $0x8] sm:$0xff]  ;;  %v282_v15 = vld [vmem:[%s2664_s1] sm:$0xff]  ;;  %v1314_v22 = vld [vmem:[%s2664_s1 + $0xb0] sm:$0xff]  ;;  %s1902_s14 = sshll.u32 %s1964_s28, 4  ;;  %s1903_s14 = int_to_ptr.vmem [resolvable:$false] %s1902_s14 }
  0x19   : > { %1575 = vmatprep.subr.mxu1 %v287_v5  ;;  %1557 = vmatpush3.msra.mxu0 %v1301_v4  ;;  %v278_v16 = vld [vmem:[%s2100_s17 + $0x1] sm:$0xff]  ;;  %v279_v18 = vld [vmem:[%s2100_s17 + $0x9] sm:$0xff]  ;;  %v1311_v25 = vld [vmem:[%s2664_s1 + $0x98] sm:$0xff] }
  0x1a   : > { %1576 = vmatpush3.msra.mxu1 %v287_v5  ;;  %1558 = vmatprep.subr.mxu0 %v1300_v6  ;;  %v276_v17 = vld [vmem:[%s2100_s17] sm:$0xff]  ;;  %v277_v19 = vld [vmem:[%s2100_s17 + $0x8] sm:$0xff]  ;;  %v1310_v26 = vld [vmem:[%s2664_s1 + $0x90] sm:$0xff] }
  0x1b   : > { %1577 = vmatprep.subr.mxu1 %v286_v7  ;;  %1559 = vmatpush3.msra.mxu0 %v1300_v6  ;;  %v280_v21 = vld [vmem:[%s2100_s17 + $0x2] sm:$0xff]  ;;  %v281_v29 = vld [vmem:[%s2100_s17 + $0xa] sm:$0xff]  ;;  %v1334_v30 = vld [vmem:[%s2666_s3 + $0xf8] sm:$0xff]  ;;  %s1904_s17 = scalar_lea.vmem %s1903_s14, 32 }
  0x1c   : > { %1578 = vmatpush3.msra.mxu1 %v286_v7  ;;  %1560 = vmatprep.subr.mxu0 %v1299_v8  ;;  %v1313_v23 = vld [vmem:[%s2664_s1 + $0xa8] sm:$0xff]  ;;  %v1312_v24 = vld [vmem:[%s2664_s1 + $0xa0] sm:$0xff]  ;;  %v597_v31 = vld [vmem:[%s2666_s3 + $0x78] sm:$0xff] }
  0x1d   : > { %1579 = vmatprep.subr.mxu1 %v285_v9  ;;  %1561 = vmatpush3.msra.mxu0 %v1299_v8  ;;  %v1309_v27 = vld [vmem:[%s2664_s1 + $0x88] sm:$0xff]  ;;  %v1308_v28 = vld [vmem:[%s2664_s1 + $0x80] sm:$0xff]  ;;  %v1333_v33 = vld [vmem:[%s2666_s3 + $0xf0] sm:$0xff] }
  0x1e   : > { %1580 = vmatpush3.msra.mxu1 %v285_v9  ;;  %1562 = vmatprep.subr.mxu0 %v1298_v10  ;;  %v596_v34 = vld [vmem:[%s2666_s3 + $0x70] sm:$0xff]  ;;  %v1332_v35 = vld [vmem:[%s2666_s3 + $0xe8] sm:$0xff]  ;;  %v1331_v37 = vld [vmem:[%s2666_s3 + $0xe0] sm:$0xff] }
  0x1f   : > { %1581 = vmatprep.subr.mxu1 %v284_v11  ;;  %1563 = vmatpush3.msra.mxu0 %v1298_v10  ;;  %v595_v36 = vld [vmem:[%s2666_s3 + $0x68] sm:$0xff]  ;;  %v594_v38 = vld [vmem:[%s2666_s3 + $0x60] sm:$0xff]  ;;  %v1330_v39 = vld [vmem:[%s2666_s3 + $0xd8] sm:$0xff] }
  0x20   : > { %1582 = vmatpush3.msra.mxu1 %v284_v11  ;;  %1564 = vmatprep.subr.mxu0 %v1297_v12  ;;  %v593_v40 = vld [vmem:[%s2666_s3 + $0x58] sm:$0xff]  ;;  %v1329_v41 = vld [vmem:[%s2666_s3 + $0xd0] sm:$0xff]  ;;  %v1328_v43 = vld [vmem:[%s2666_s3 + $0xc8] sm:$0xff] }
  0x21   : > { %1583 = vmatprep.subr.mxu1 %v283_v13  ;;  %1565 = vmatpush3.msra.mxu0 %v1297_v12  ;;  %v592_v42 = vld [vmem:[%s2666_s3 + $0x50] sm:$0xff]  ;;  %v591_v44 = vld [vmem:[%s2666_s3 + $0x48] sm:$0xff]  ;;  %v1327_v45 = vld [vmem:[%s2666_s3 + $0xc0] sm:$0xff] }
  0x22   : > { %1584 = vmatpush3.msra.mxu1 %v283_v13  ;;  %1566 = vmatprep.subr.mxu0 %v1296_v14  ;;  %v590_v46 = vld [vmem:[%s2666_s3 + $0x40] sm:$0xff]  ;;  %v1326_v47 = vld [vmem:[%s2666_s3 + $0xb8] sm:$0xff]  ;;  %v1325_v49 = vld [vmem:[%s2666_s3 + $0xb0] sm:$0xff] }
  0x23   : > { %1585 = vmatprep.subr.mxu1 %v282_v15  ;;  %1567 = vmatpush3.msra.mxu0 %v1296_v14  ;;  %v589_v48 = vld [vmem:[%s2666_s3 + $0x38] sm:$0xff]  ;;  %v588_v50 = vld [vmem:[%s2666_s3 + $0x30] sm:$0xff]  ;;  %v1324_v51 = vld [vmem:[%s2666_s3 + $0xa8] sm:$0xff] }
  0x24   : > { %1568 = vmatprep.mubr.msk.f32.mxu0 %vm299_vm0, %v278_v16  ;;  %1586 = vmatpush3.msra.mxu1 %v282_v15  ;;  %v587_v52 = vld [vmem:[%s2666_s3 + $0x28] sm:$0xff]  ;;  %v1323_v55 = vld [vmem:[%s2666_s3 + $0xa0] sm:$0xff]  ;;  %v1322_v59 = vld [vmem:[%s2666_s3 + $0x98] sm:$0xff] }
  0x25   : > { %1587 = vmatprep.mubr.msk.f32.mxu1 %vm299_vm0, %v276_v17  ;;  %1569 = vmatmul.mubr.msk.f32.vlgmr.msra.gmra.mxu0 %vm299_vm0, %v279_v18  ;;  %v1318_v61 = vld [vmem:[%s2665_s2] ss:$0 sm:$0xff]  ;;  %v1321_v0 = vld [vmem:[%s2666_s3 + $0x90] sm:$0xff]  ;;  %v1320_v4 = vld [vmem:[%s2666_s3 + $0x88] sm:$0xff] }
  0x26   : > { %1588 = vmatmul.mubr.msk.f32.vlgmr.msra.gmra.mxu1 %vm299_vm0, %v277_v19  ;;  %1590 = vmatprep.subr.mxu0 %v1315_v20  ;;  %v1319_v7 = vld [vmem:[%s2666_s3 + $0x80] sm:$0xff]  ;;  %v585_v10 = vld [vmem:[%s2666_s3 + $0x18] sm:$0xff]  ;;  %v584_v11 = vld [vmem:[%s2666_s3 + $0x10] sm:$0xff] }
  0x27   : > { %1606 = vmatprep.mubr.msk.f32.mxu0 %vm299_vm0, %v280_v21  ;;  %1591 = vmatpush3.msra.mxu0 %v1315_v20  ;;  %v586_v8 = vld [vmem:[%s2666_s3 + $0x20] sm:$0xff]  ;;  %v583_v12 = vld [vmem:[%s2666_s3 + $0x8] sm:$0xff]  ;;  %v1350_v19 = vld [vmem:[%s2666_s3 + $0x178] sm:$0xff] }
  0x28   : > { %1592 = vmatprep.subr.mxu0 %v1314_v22  ;;  %1609 = vmatprep.subr.mxu1 %v1960_v32  ;;  %v582_v13 = vld [vmem:[%s2666_s3] sm:$0xff]  ;;  %v1349_v20 = vld [vmem:[%s2666_s3 + $0x170] sm:$0xff]  ;;  %v1348_v21 = vld [vmem:[%s2666_s3 + $0x168] sm:$0xff] }
  0x29   : > { %1593 = vmatpush3.msra.mxu0 %v1314_v22  ;;  %1610 = vmatpush3.msra.mxu1 %v1334_v30  ;;  %v1347_v22 = vld [vmem:[%s2666_s3 + $0x160] sm:$0xff]  ;;  %v1340_v30 = vld [vmem:[%s2666_s3 + $0x128] sm:$0xff] }
  0x2a   : > { %1594 = vmatprep.subr.mxu0 %v1313_v23  ;;  %1611 = vmatprep.subr.mxu1 %v1960_v32 }
  0x2b   : > { %1595 = vmatpush3.msra.mxu0 %v1313_v23  ;;  %1612 = vmatpush3.msra.mxu1 %v1333_v33  ;;  %v1346_v23 = vld [vmem:[%s2666_s3 + $0x158] sm:$0xff] }
  0x2c   : > { %1596 = vmatprep.subr.mxu0 %v1312_v24  ;;  %1613 = vmatprep.subr.mxu1 %v1960_v32  ;;  %v1338_v33 = vld [vmem:[%s2666_s3 + $0x118] sm:$0xff] }
  0x2d   : > { %1597 = vmatpush3.msra.mxu0 %v1312_v24  ;;  %1614 = vmatpush3.msra.mxu1 %v1332_v35  ;;  %v1336_v35 = vld [vmem:[%s2666_s3 + $0x108] sm:$0xff] }
  0x2e   : > { %1598 = vmatprep.subr.mxu0 %v1311_v25  ;;  %1615 = vmatprep.subr.mxu1 %v1960_v32 }
  0x2f   : > { %1599 = vmatpush3.msra.mxu0 %v1311_v25  ;;  %1616 = vmatpush3.msra.mxu1 %v1331_v37  ;;  %v1345_v25 = vld [vmem:[%s2666_s3 + $0x150] sm:$0xff] }
  0x30   : > { %1600 = vmatprep.subr.mxu0 %v1310_v26  ;;  %1617 = vmatprep.subr.mxu1 %v1960_v32 }
  0x31   : > { %1601 = vmatpush3.msra.mxu0 %v1310_v26  ;;  %1618 = vmatpush3.msra.mxu1 %v1330_v39  ;;  %v1344_v26 = vld [vmem:[%s2666_s3 + $0x148] sm:$0xff]  ;;  %v877_v39 = vld [vmem:[%s2668_s5 + $0x70] sm:$0xff] }
  0x32   : > { %1602 = vmatprep.subr.mxu0 %v1309_v27  ;;  %1619 = vmatprep.subr.mxu1 %v1960_v32 }
  0x33   : > { %1603 = vmatpush3.msra.mxu0 %v1309_v27  ;;  %1620 = vmatpush3.msra.mxu1 %v1329_v41  ;;  %v1343_v27 = vld [vmem:[%s2666_s3 + $0x140] sm:$0xff]  ;;  %v1366_v41 = vld [vmem:[%s2668_s5 + $0xf0] sm:$0xff] }
  0x34   : > { %1604 = vmatprep.subr.mxu0 %v1308_v28  ;;  %1621 = vmatprep.subr.mxu1 %v1960_v32 }
  0x35   : > { %1605 = vmatpush3.msra.mxu0 %v1308_v28  ;;  %1622 = vmatpush3.msra.mxu1 %v1328_v43  ;;  %v1342_v28 = vld [vmem:[%s2666_s3 + $0x138] sm:$0xff]  ;;  %v1365_v43 = vld [vmem:[%s2668_s5 + $0xe8] sm:$0xff] }
  0x36   : > { %1607 = vmatmul.mubr.msk.f32.vlgmr.msra.gmra.mxu0 %vm299_vm0, %v281_v29  ;;  %1644 = vmatprep.subr.mxu0 %v1960_v32  ;;  %v1341_v29 = vld [vmem:[%s2666_s3 + $0x130] sm:$0xff] }
  0x37   : > { %1645 = vmatpush3.msra.mxu0 %v597_v31  ;;  %1623 = vmatprep.subr.mxu1 %v1960_v32  ;;  %v1339_v31 = vld [vmem:[%s2666_s3 + $0x120] sm:$0xff] }
  0x38   : > { %1646 = vmatprep.subr.mxu0 %v1960_v32  ;;  %1624 = vmatpush3.msra.mxu1 %v1327_v45  ;;  %v1364_v45 = vld [vmem:[%s2668_s5 + $0xe0] sm:$0xff] }
  0x39   : > { %1647 = vmatpush3.msra.mxu0 %v596_v34  ;;  %1625 = vmatprep.subr.mxu1 %v1960_v32  ;;  %v1337_v34 = vld [vmem:[%s2666_s3 + $0x110] sm:$0xff] }
  0x3a   : > { %1648 = vmatprep.subr.mxu0 %v1960_v32  ;;  %1626 = vmatpush3.msra.mxu1 %v1326_v47  ;;  %v1363_v47 = vld [vmem:[%s2668_s5 + $0xd8] sm:$0xff] }
  0x3b   : > { %1649 = vmatpush3.msra.mxu0 %v595_v36  ;;  %1627 = vmatprep.subr.mxu1 %v1960_v32  ;;  %v1335_v36 = vld [vmem:[%s2666_s3 + $0x100] sm:$0xff] }
  0x3c   : > { %1650 = vmatprep.subr.mxu0 %v1960_v32  ;;  %1628 = vmatpush3.msra.mxu1 %v1325_v49  ;;  %v1362_v49 = vld [vmem:[%s2668_s5 + $0xd0] sm:$0xff] }
  0x3d   : > { %1651 = vmatpush3.msra.mxu0 %v594_v38  ;;  %1629 = vmatprep.subr.mxu1 %v1960_v32  ;;  %v878_v38 = vld [vmem:[%s2668_s5 + $0x78] sm:$0xff] }
  0x3e   : > { %1652 = vmatprep.subr.mxu0 %v1960_v32  ;;  %1630 = vmatpush3.msra.mxu1 %v1324_v51  ;;  %v1361_v51 = vld [vmem:[%s2668_s5 + $0xc8] sm:$0xff] }
  0x3f   : > { %1653 = vmatpush3.msra.mxu0 %v593_v40  ;;  %1631 = vmatprep.subr.mxu1 %v1960_v32  ;;  %v1367_v40 = vld [vmem:[%s2668_s5 + $0xf8] sm:$0xff] }
  0x40   : > { %1654 = vmatprep.subr.mxu0 %v1960_v32  ;;  %1632 = vmatpush3.msra.mxu1 %v1323_v55  ;;  %v1359_v55 = vld [vmem:[%s2668_s5 + $0xb8] sm:$0xff] }
  0x41   : > { %1655 = vmatpush3.msra.mxu0 %v592_v42  ;;  %1633 = vmatprep.subr.mxu1 %v1960_v32  ;;  %v876_v42 = vld [vmem:[%s2668_s5 + $0x68] sm:$0xff] }
  0x42   : > { %1656 = vmatprep.subr.mxu0 %v1960_v32  ;;  %1634 = vmatpush3.msra.mxu1 %v1322_v59  ;;  %v1357_v59 = vld [vmem:[%s2668_s5 + $0xa8] sm:$0xff] }
  0x43   : > { %1657 = vmatpush3.msra.mxu0 %v591_v44  ;;  %1635 = vmatprep.subr.mxu1 %v1960_v32  ;;  %v875_v44 = vld [vmem:[%s2668_s5 + $0x60] sm:$0xff] }
  0x44   : > { %1658 = vmatprep.subr.mxu0 %v1960_v32  ;;  %1636 = vmatpush3.msra.mxu1 %v1321_v0  ;;  %v865_v0 = vld [vmem:[%s2668_s5 + $0x10] sm:$0xff] }
  0x45   : > { %1659 = vmatpush3.msra.mxu0 %v590_v46  ;;  %1637 = vmatprep.subr.mxu1 %v1960_v32  ;;  %v874_v46 = vld [vmem:[%s2668_s5 + $0x58] sm:$0xff] }
  0x46   : > { %1660 = vmatprep.subr.mxu0 %v1960_v32  ;;  %1638 = vmatpush3.msra.mxu1 %v1320_v4 }
  0x47   : > { %1661 = vmatpush3.msra.mxu0 %v589_v48  ;;  %1639 = vmatprep.subr.mxu1 %v1960_v32  ;;  %v873_v48 = vld [vmem:[%s2668_s5 + $0x50] sm:$0xff] }
  0x48   : > { %1662 = vmatprep.subr.mxu0 %v1960_v32  ;;  %1640 = vmatpush3.msra.mxu1 %v1319_v7 }
  0x49   : > { %1663 = vmatpush3.msra.mxu0 %v588_v50  ;;  %1641 = vmatprep.mubr.msk.f32.mxu1 %vm1961_vm1, %v1960_v32  ;;  %v872_v50 = vld [vmem:[%s2668_s5 + $0x48] sm:$0xff] }
  0x4a   : > { %1664 = vmatprep.subr.mxu0 %v1960_v32  ;;  %1676 = vmatprep.mubr.msk.f32.mxu0 %vm1961_vm1, %v1960_v32 }
  0x4b   : > { %1665 = vmatpush3.msra.mxu0 %v587_v52  ;;  %1679 = vmatprep.subr.mxu1 %v1960_v32  ;;  %v871_v52 = vld [vmem:[%s2668_s5 + $0x40] sm:$0xff] }
  0x4c   : > { %1666 = vmatprep.subr.mxu0 %v1960_v32 }
  0x4d   : > { %1667 = vmatpush3.msra.mxu0 %v586_v8 }
  0x4e   : > { %1668 = vmatprep.subr.mxu0 %v1960_v32 }
  0x4f   : > { %1669 = vmatpush3.msra.mxu0 %v585_v10 }
  0x50   : > { %1670 = vmatprep.subr.mxu0 %v1960_v32 }
  0x51   : > { %1671 = vmatpush3.msra.mxu0 %v584_v11 }
  0x52   : > { %1672 = vmatprep.subr.mxu0 %v1960_v32 }
  0x53   : > { %1673 = vmatpush3.msra.mxu0 %v583_v12 }
  0x54   : > { %1674 = vmatprep.subr.mxu0 %v1960_v32 }
  0x55   : > { %1675 = vmatpush3.msra.mxu0 %v582_v13  ;;  %v863_v13 = vld [vmem:[%s2668_s5] sm:$0xff] }
  0x56   : > { %1714 = vmatprep.subr.mxu0 %v1960_v32 }
  0xe5   : > { %v1570_v53 = vpop.f32.mrf.mxu0 }
  0xe6   : > { %v1589_v54 = vpop.f32.mrf.mxu1 }
  0xe7   : > { %v372_v56 = vpop.f32.mrf.mxu0  ;;  %v459_v58 = vadd.f32 %v1589_v54, %v1570_v53  ;;  %v1360_v53 = vld [vmem:[%s2668_s5 + $0xc0] sm:$0xff]  ;;  %v870_v54 = vld [vmem:[%s2668_s5 + $0x38] sm:$0xff] }
  0xe8   : > { %v453_v57 = vpop.f32.mrf.mxu1 }
  0xe9   : > { %v454_v62 = vadd.f32 %v453_v57, %v372_v56  ;;  %v869_v56 = vld [vmem:[%s2668_s5 + $0x30] sm:$0xff] }
  0xea   : > { %v1358_v57 = vld [vmem:[%s2668_s5 + $0xb0] sm:$0xff] }
  0xf6   : > { %v1608_v60 = vpop.f32.mrf.mxu0 }
  0xf7   : > { %v553_v63 = vadd.f32 %v1608_v60, %v459_v58  ;;  %v868_v58 = vld [vmem:[%s2668_s5 + $0x28] sm:$0xff]  ;;  %v867_v60 = vld [vmem:[%s2668_s5 + $0x20] sm:$0xff] }
  0xf8   : > { %v543_v1 = vpop.f32.mrf.mxu0 }
  0xf9   : > { %v562_v2 = vadd.f32 %v1318_v61, %v553_v63  ;;  %v552_v3 = vadd.f32 %v543_v1, %v454_v62  ;;  %v866_v62 = vld [vmem:[%s2668_s5 + $0x18] sm:$0xff]  ;;  %v1354_v1 = vld [vmem:[%s2668_s5 + $0x90] sm:$0xff] }
  0xfa   : > { %v1355_v63 = vld [vmem:[%s2668_s5 + $0x98] sm:$0xff] }
  0xfb   : > { %v564_v5 = vmax.f32 %v562_v2, 0.0  ;;  %v561_v6 = vadd.f32 %v1318_v61, %v552_v3  ;;  %v1356_v61 = vld [vmem:[%s2668_s5 + $0xa0] sm:$0xff]  ;;  %v864_v2 = vld [vmem:[%s2668_s5 + $0x8] sm:$0xff] }
  0xfd   : > { %566 = vst [vmem:[#allocation3 + $0x8] sm:$0xff] %v564_v5  ;;  %v563_v9 = vmax.f32 %v561_v6, 0.0 }
  0xff   : > { %565 = vst [vmem:[#allocation3] sm:$0xff] %v563_v9  ;;  %v1351_v9 = vld [vmem:[%s2667_s4] ss:$0 sm:$0xff] }
 0x106   : > { %v567_v14 = vld [vmem:[#allocation3] ss:$2 sm:$0xff]  ;;  %v569_v15 = vld [vmem:[#allocation3 + $0x1] ss:$2 sm:$0xff] }
 0x107   : > { %v570_v16 = vmax.f32 %v567_v14, %v569_v15  ;;  %v1353_v14 = vld [vmem:[%s2668_s5 + $0x88] sm:$0xff] }
 0x109   : > { %572 = vrot.lane.b32.xlu0 %v570_v16, %s1962_s22  ;;  %s270_s22 = scalar_lea.vmem [#allocation5], %s269_s19 }
 0x17b   : > { %v573_v17 = vpop.permute.xlu0 %572 }
 0x17c   : > { %v575_v18 = vmax.f32 %v570_v16, %v573_v17  ;;  %v1352_v16 = vld [vmem:[%s2668_s5 + $0x80] sm:$0xff] }
 0x17e   : > { %578 = vst [vmem:[#allocation2 + $0x1] sm:$0xff] %v575_v18  ;;  %1642 = vmatmul.mubr.f32.vlgmr.msra.gmra.mxu1 %v575_v18 }
 0x17f   : > { %1680 = vmatpush3.msra.mxu1 %v1350_v19  ;;  %1711 = vmatprep.mubr.msk.f32.mxu1 %vm1961_vm1, %v1960_v32 }
 0x180   : > { %1681 = vmatprep.subr.mxu1 %v1960_v32 }
 0x181   : > { %1682 = vmatpush3.msra.mxu1 %v1349_v20 }
 0x182   : > { %1683 = vmatprep.subr.mxu1 %v1960_v32 }
 0x183   : > { %1684 = vmatpush3.msra.mxu1 %v1348_v21 }
 0x184   : > { %1685 = vmatprep.subr.mxu1 %v1960_v32 }
 0x185   : > { %v579_v24 = vld [vmem:[#allocation2] sm:$0xff]  ;;  %1686 = vmatpush3.msra.mxu1 %v1347_v22  ;;  %v1383_v22 = vld [vmem:[%s2668_s5 + $0x178] sm:$0xff] }
 0x186   : > { %1677 = vmatmul.mubr.f32.vlgmr.msra.gmra.mxu0 %v579_v24  ;;  %1687 = vmatprep.subr.mxu1 %v1960_v32  ;;  %v581_v37 = vld [vmem:[#allocation2 + $0x2] sm:$0xff]  ;;  %v1382_v24 = vld [vmem:[%s2668_s5 + $0x170] sm:$0xff] }
 0x187   : > { %1688 = vmatpush3.msra.mxu1 %v1346_v23  ;;  %1746 = vmatprep.mubr.msk.f32.mxu0 %vm1961_vm1, %v1960_v32 }
 0x188   : > { %1689 = vmatprep.subr.mxu1 %v1960_v32  ;;  %1715 = vmatpush3.msra.mxu0 %v878_v38  ;;  %v1393_v38 = vld [vmem:[%s2668_s5 + $0x1c8] sm:$0xff] }
 0x189   : > { %1690 = vmatpush3.msra.mxu1 %v1345_v25  ;;  %1716 = vmatprep.subr.mxu0 %v1960_v32  ;;  %v1399_v25 = vld [vmem:[%s2668_s5 + $0x1f8] sm:$0xff] }
 0x18a   : > { %1691 = vmatprep.subr.mxu1 %v1960_v32  ;;  %1717 = vmatpush3.msra.mxu0 %v877_v39  ;;  %v1375_v39 = vld [vmem:[%s2668_s5 + $0x138] sm:$0xff] }
 0x18b   : > { %1692 = vmatpush3.msra.mxu1 %v1344_v26  ;;  %1718 = vmatprep.subr.mxu0 %v1960_v32  ;;  %v1381_v26 = vld [vmem:[%s2668_s5 + $0x168] sm:$0xff] }
 0x18c   : > { %1693 = vmatprep.subr.mxu1 %v1960_v32  ;;  %1719 = vmatpush3.msra.mxu0 %v876_v42  ;;  %v1391_v42 = vld [vmem:[%s2668_s5 + $0x1b8] sm:$0xff] }
 0x18d   : > { %1694 = vmatpush3.msra.mxu1 %v1343_v27  ;;  %1720 = vmatprep.subr.mxu0 %v1960_v32  ;;  %v1398_v27 = vld [vmem:[%s2668_s5 + $0x1f0] sm:$0xff] }
 0x18e   : > { %1695 = vmatprep.subr.mxu1 %v1960_v32  ;;  %1721 = vmatpush3.msra.mxu0 %v875_v44  ;;  %v1390_v44 = vld [vmem:[%s2668_s5 + $0x1b0] sm:$0xff] }
 0x18f   : > { %1696 = vmatpush3.msra.mxu1 %v1342_v28  ;;  %1722 = vmatprep.subr.mxu0 %v1960_v32  ;;  %v1380_v28 = vld [vmem:[%s2668_s5 + $0x160] sm:$0xff] }
 0x190   : > { %1697 = vmatprep.subr.mxu1 %v1960_v32  ;;  %1723 = vmatpush3.msra.mxu0 %v874_v46  ;;  %v1389_v46 = vld [vmem:[%s2668_s5 + $0x1a8] sm:$0xff] }
 0x191   : > { %1698 = vmatpush3.msra.mxu1 %v1341_v29  ;;  %1724 = vmatprep.subr.mxu0 %v1960_v32  ;;  %v1397_v29 = vld [vmem:[%s2668_s5 + $0x1e8] sm:$0xff] }
 0x192   : > { %1699 = vmatprep.subr.mxu1 %v1960_v32  ;;  %1725 = vmatpush3.msra.mxu0 %v873_v48  ;;  %v1388_v48 = vld [vmem:[%s2668_s5 + $0x1a0] sm:$0xff] }
 0x193   : > { %1700 = vmatpush3.msra.mxu1 %v1340_v30  ;;  %1726 = vmatprep.subr.mxu0 %v1960_v32  ;;  %v1379_v30 = vld [vmem:[%s2668_s5 + $0x158] sm:$0xff] }
 0x194   : > { %1701 = vmatprep.subr.mxu1 %v1960_v32  ;;  %1727 = vmatpush3.msra.mxu0 %v872_v50  ;;  %v1387_v50 = vld [vmem:[%s2668_s5 + $0x198] sm:$0xff] }
 0x195   : > { %1702 = vmatpush3.msra.mxu1 %v1339_v31  ;;  %1728 = vmatprep.subr.mxu0 %v1960_v32  ;;  %v1396_v31 = vld [vmem:[%s2668_s5 + $0x1e0] sm:$0xff] }
 0x196   : > { %1703 = vmatprep.subr.mxu1 %v1960_v32  ;;  %1729 = vmatpush3.msra.mxu0 %v871_v52  ;;  %v1386_v52 = vld [vmem:[%s2668_s5 + $0x190] sm:$0xff] }
 0x197   : > { %1704 = vmatpush3.msra.mxu1 %v1338_v33  ;;  %1730 = vmatprep.subr.mxu0 %v1960_v32  ;;  %v1378_v33 = vld [vmem:[%s2668_s5 + $0x150] sm:$0xff] }
 0x198   : > { %1705 = vmatprep.subr.mxu1 %v1960_v32  ;;  %1731 = vmatpush3.msra.mxu0 %v870_v54  ;;  %v1385_v54 = vld [vmem:[%s2668_s5 + $0x188] sm:$0xff] }
 0x199   : > { %1706 = vmatpush3.msra.mxu1 %v1337_v34  ;;  %1732 = vmatprep.subr.mxu0 %v1960_v32  ;;  %v1395_v34 = vld [vmem:[%s2668_s5 + $0x1d8] sm:$0xff] }
 0x19a   : > { %1707 = vmatprep.subr.mxu1 %v1960_v32  ;;  %1733 = vmatpush3.msra.mxu0 %v869_v56  ;;  %v1384_v56 = vld [vmem:[%s2668_s5 + $0x180] sm:$0xff] }
 0x19b   : > { %1708 = vmatpush3.msra.mxu1 %v1336_v35  ;;  %1734 = vmatprep.subr.mxu0 %v1960_v32  ;;  %v1377_v35 = vld [vmem:[%s2668_s5 + $0x148] sm:$0xff] }
 0x19c   : > { %1709 = vmatprep.subr.mxu1 %v1960_v32  ;;  %1735 = vmatpush3.msra.mxu0 %v868_v58 }
 0x19d   : > { %1710 = vmatpush3.msra.mxu1 %v1335_v36  ;;  %1736 = vmatprep.subr.mxu0 %v1960_v32  ;;  %v1394_v36 = vld [vmem:[%s2668_s5 + $0x1d0] sm:$0xff] }
 0x19e   : > { %1712 = vmatmul.mubr.f32.vlgmr.msra.gmra.mxu1 %v581_v37  ;;  %1749 = vmatprep.subr.mxu1 %v1960_v32  ;;  %v1376_v37 = vld [vmem:[%s2668_s5 + $0x140] sm:$0xff] }
 0x19f   : > { %1781 = vmatprep.mubr.msk.f32.mxu1 %vm1961_vm1, %v1960_v32  ;;  %1750 = vmatpush3.msra.mxu1 %v1367_v40  ;;  %v1392_v40 = vld [vmem:[%s2668_s5 + $0x1c0] sm:$0xff] }
 0x1a0   : > { %1751 = vmatprep.subr.mxu1 %v1960_v32  ;;  %1737 = vmatpush3.msra.mxu0 %v867_v60 }
 0x1a1   : > { %1752 = vmatpush3.msra.mxu1 %v1366_v41  ;;  %1738 = vmatprep.subr.mxu0 %v1960_v32  ;;  %v1374_v41 = vld [vmem:[%s2668_s5 + $0x130] sm:$0xff] }
 0x1a2   : > { %1753 = vmatprep.subr.mxu1 %v1960_v32  ;;  %1739 = vmatpush3.msra.mxu0 %v866_v62  ;;  %v862_v62 = vld [vmem:[%s2669_s6] sm:$0x1] }
 0x1a3   : > { %1754 = vmatpush3.msra.mxu1 %v1365_v43  ;;  %1740 = vmatprep.subr.mxu0 %v1960_v32  ;;  %v1373_v43 = vld [vmem:[%s2668_s5 + $0x128] sm:$0xff] }
 0x1a4   : > { %1755 = vmatprep.subr.mxu1 %v1960_v32  ;;  %1741 = vmatpush3.msra.mxu0 %v865_v0 }
 0x1a5   : > { %1756 = vmatpush3.msra.mxu1 %v1364_v45  ;;  %1742 = vmatprep.subr.mxu0 %v1960_v32  ;;  %v1372_v45 = vld [vmem:[%s2668_s5 + $0x120] sm:$0xff] }
 0x1a6   : > { %1757 = vmatprep.subr.mxu1 %v1960_v32  ;;  %1743 = vmatpush3.msra.mxu0 %v864_v2 }
 0x1a7   : > { %1758 = vmatpush3.msra.mxu1 %v1363_v47  ;;  %1744 = vmatprep.subr.mxu0 %v1960_v32  ;;  %v1371_v47 = vld [vmem:[%s2668_s5 + $0x118] sm:$0xff] }
 0x1a8   : > { %1759 = vmatprep.subr.mxu1 %v1960_v32  ;;  %1745 = vmatpush3.msra.mxu0 %v863_v13 }
 0x1a9   : > { %1760 = vmatpush3.msra.mxu1 %v1362_v49  ;;  %1784 = vmatprep.subr.mxu0 %v1960_v32  ;;  %v1370_v49 = vld [vmem:[%s2668_s5 + $0x110] sm:$0xff] }
 0x1aa   : > { %1761 = vmatprep.subr.mxu1 %v1960_v32 }
 0x1ab   : > { %1762 = vmatpush3.msra.mxu1 %v1361_v51  ;;  %v1369_v51 = vld [vmem:[%s2668_s5 + $0x108] sm:$0xff] }
 0x1ac   : > { %1763 = vmatprep.subr.mxu1 %v1960_v32 }
 0x1ad   : > { %1764 = vmatpush3.msra.mxu1 %v1360_v53  ;;  %v1368_v53 = vld [vmem:[%s2668_s5 + $0x100] sm:$0xff] }
 0x1ae   : > { %1765 = vmatprep.subr.mxu1 %v1960_v32 }
 0x1af   : > { %1766 = vmatpush3.msra.mxu1 %v1359_v55 }
 0x1b0   : > { %1767 = vmatprep.subr.mxu1 %v1960_v32 }
 0x1b1   : > { %1768 = vmatpush3.msra.mxu1 %v1358_v57 }
 0x1b2   : > { %1769 = vmatprep.subr.mxu1 %v1960_v32 }
 0x1b3   : > { %1770 = vmatpush3.msra.mxu1 %v1357_v59 }
 0x1b4   : > { %1771 = vmatprep.subr.mxu1 %v1960_v32 }
 0x1b5   : > { %1772 = vmatpush3.msra.mxu1 %v1356_v61 }
 0x1b6   : > { %1773 = vmatprep.subr.mxu1 %v1960_v32 }
 0x1b7   : > { %1774 = vmatpush3.msra.mxu1 %v1355_v63 }
 0x1b8   : > { %1775 = vmatprep.subr.mxu1 %v1960_v32 }
 0x1b9   : > { %1776 = vmatpush3.msra.mxu1 %v1354_v1 }
 0x1ba   : > { %1777 = vmatprep.subr.mxu1 %v1960_v32 }
 0x1bb   : > { %1778 = vmatpush3.msra.mxu1 %v1353_v14 }
 0x1bc   : > { %1779 = vmatprep.subr.mxu1 %v1960_v32 }
 0x1bd   : > { %1780 = vmatpush3.msra.mxu1 %v1352_v16 }
 0x1be   : > { %1819 = vmatprep.subr.mxu1 %v1960_v32 }
 0x23e   : > { %v681_v3 = vpop.f32.mrf.mxu1 }
 0x240   : > { %v1643_v4 = vpop.f32.mrf.mxu1 }
 0x246   : > { %v751_v5 = vpop.f32.mrf.mxu0 }
 0x247   : > { %v752_v7 = vadd.f32 %v751_v5, %v681_v3 }
 0x248   : > { %v1678_v6 = vpop.f32.mrf.mxu0 }
 0x25e   : > { %v838_v8 = vpop.f32.mrf.mxu1 }
 0x25f   : > { %v842_v10 = vadd.f32 %v838_v8, %v752_v7 }
 0x260   : > { %v1713_v11 = vpop.f32.mrf.mxu1 }
 0x261   : > { %v850_v12 = vadd.f32 %v1351_v9, %v842_v10 }
 0x263   : > { %v851_v15 = vmax.f32 %v850_v12, 0.0 }
 0x265   : > { %852 = vst [vmem:[#allocation4] sm:$0xff] %v851_v15 }
 0x26c   : > { %v853_v17 = vld [vmem:[#allocation4] ss:$2 sm:$0xf]  ;;  %v855_v18 = vld [vmem:[#allocation4 + $0x1] ss:$2 sm:$0xf] }
 0x26d   : > { %v856_v19 = vmax.f32 %v853_v17, %v855_v18 }
 0x26f   : > { %858 = vrot.lane.b32.xlu0 %v856_v19, %s1963_s20  ;;  %s1236_s20 = sshll.u32 %s270_s22, 4  ;;  %s1237_s20 = int_to_ptr.vmem [resolvable:$true] %s1236_s20 }
 0x270   : > { %s1898_s8 = scalar_lea.vmem %s1237_s20, 16  ;;  %p1905_p0 = scmp.lt.s32.totalorder %s1237_s20, %s1903_s14 }
 0x271   : > { %p1899_p11 = scmp.ne.s32.totalorder %s1237_s20, %s1898_s8  ;;  %p1906_p1 = scmp.lt.s32.totalorder %s1904_s17, %s1898_s8 }
 0x273   : > { %p1900_p12 = pnand %p1899_p11, %p2043_p5  ;;  %p1907_p2 = por %p1906_p1, %p1905_p0 }
 0x275   : > { %p1901_p13 = pneg %p1900_p12 }
 0x277   : > { %p1908_p3 = pnand %p1907_p2, %p1901_p13 }
 0x2e1   : > { %v859_v20 = vpop.permute.xlu0 %858 }
 0x2e2   : > { %v2484_v21 = vmax.f32 %v856_v19, %v859_v20 }
 0x2e4   : > { %1747 = vmatmul.mubr.f32.vlgmr.msra.gmra.mxu0 %v2484_v21  ;;  %v968_v23 = vrot.slane %v2484_v21, 1  ;;  %v1058_v55 = vrot.slane %v2484_v21, 2  ;;  %v1148_v57 = vrot.slane %v2484_v21, 3 }
 0x2e5   : > { %1785 = vmatpush3.msra.mxu0 %v1383_v22  ;;  %1816 = vmatprep.mubr.msk.f32.mxu0 %vm1961_vm1, %v1960_v32 }
 0x2e6   : > { %1786 = vmatprep.subr.mxu0 %v1960_v32  ;;  %1782 = vmatmul.mubr.f32.vlgmr.msra.gmra.mxu1 %v968_v23 }
 0x2e7   : > { %1787 = vmatpush3.msra.mxu0 %v1382_v24  ;;  %1820 = vmatpush3.msra.mxu1 %v1399_v25 }
 0x2e8   : > { %1788 = vmatprep.subr.mxu0 %v1960_v32  ;;  %1821 = vmatprep.subr.mxu1 %v1960_v32 }
 0x2e9   : > { %1789 = vmatpush3.msra.mxu0 %v1381_v26  ;;  %1822 = vmatpush3.msra.mxu1 %v1398_v27 }
 0x2ea   : > { %1790 = vmatprep.subr.mxu0 %v1960_v32  ;;  %1823 = vmatprep.subr.mxu1 %v1960_v32 }
 0x2eb   : > { %1791 = vmatpush3.msra.mxu0 %v1380_v28  ;;  %1824 = vmatpush3.msra.mxu1 %v1397_v29 }
 0x2ec   : > { %1792 = vmatprep.subr.mxu0 %v1960_v32  ;;  %1825 = vmatprep.subr.mxu1 %v1960_v32 }
 0x2ed   : > { %1793 = vmatpush3.msra.mxu0 %v1379_v30  ;;  %1826 = vmatpush3.msra.mxu1 %v1396_v31 }
 0x2ee   : > { %1794 = vmatprep.subr.mxu0 %v1960_v32  ;;  %1827 = vmatprep.subr.mxu1 %v1960_v32 }
 0x2ef   : > { %1795 = vmatpush3.msra.mxu0 %v1378_v33  ;;  %1828 = vmatpush3.msra.mxu1 %v1395_v34 }
 0x2f0   : > { %1796 = vmatprep.subr.mxu0 %v1960_v32  ;;  %1829 = vmatprep.subr.mxu1 %v1960_v32 }
 0x2f1   : > { %1797 = vmatpush3.msra.mxu0 %v1377_v35  ;;  %1830 = vmatpush3.msra.mxu1 %v1394_v36 }
 0x2f2   : > { %1798 = vmatprep.subr.mxu0 %v1960_v32  ;;  %1831 = vmatprep.subr.mxu1 %v1960_v32 }
 0x2f3   : > { %1799 = vmatpush3.msra.mxu0 %v1376_v37  ;;  %1832 = vmatpush3.msra.mxu1 %v1393_v38 }
 0x2f4   : > { %1800 = vmatprep.subr.mxu0 %v1960_v32  ;;  %1833 = vmatprep.subr.mxu1 %v1960_v32 }
 0x2f5   : > { %1801 = vmatpush3.msra.mxu0 %v1375_v39  ;;  %1834 = vmatpush3.msra.mxu1 %v1392_v40 }
 0x2f6   : > { %1802 = vmatprep.subr.mxu0 %v1960_v32  ;;  %1835 = vmatprep.subr.mxu1 %v1960_v32 }
 0x2f7   : > { %1803 = vmatpush3.msra.mxu0 %v1374_v41  ;;  %1836 = vmatpush3.msra.mxu1 %v1391_v42 }
 0x2f8   : > { %1804 = vmatprep.subr.mxu0 %v1960_v32  ;;  %1837 = vmatprep.subr.mxu1 %v1960_v32 }
 0x2f9   : > { %1805 = vmatpush3.msra.mxu0 %v1373_v43  ;;  %1838 = vmatpush3.msra.mxu1 %v1390_v44 }
 0x2fa   : > { %1806 = vmatprep.subr.mxu0 %v1960_v32  ;;  %1839 = vmatprep.subr.mxu1 %v1960_v32 }
 0x2fb   : > { %1807 = vmatpush3.msra.mxu0 %v1372_v45  ;;  %1840 = vmatpush3.msra.mxu1 %v1389_v46 }
 0x2fc   : > { %1808 = vmatprep.subr.mxu0 %v1960_v32  ;;  %1841 = vmatprep.subr.mxu1 %v1960_v32 }
 0x2fd   : > { %1809 = vmatpush3.msra.mxu0 %v1371_v47  ;;  %1842 = vmatpush3.msra.mxu1 %v1388_v48 }
 0x2fe   : > { %1810 = vmatprep.subr.mxu0 %v1960_v32  ;;  %1843 = vmatprep.subr.mxu1 %v1960_v32 }
 0x2ff   : > { %1811 = vmatpush3.msra.mxu0 %v1370_v49  ;;  %1844 = vmatpush3.msra.mxu1 %v1387_v50 }
 0x300   : > { %1812 = vmatprep.subr.mxu0 %v1960_v32  ;;  %1845 = vmatprep.subr.mxu1 %v1960_v32 }
 0x301   : > { %1813 = vmatpush3.msra.mxu0 %v1369_v51  ;;  %1846 = vmatpush3.msra.mxu1 %v1386_v52 }
 0x302   : > { %1814 = vmatprep.subr.mxu0 %v1960_v32  ;;  %1847 = vmatprep.subr.mxu1 %v1960_v32 }
 0x303   : > { %1815 = vmatpush3.msra.mxu0 %v1368_v53  ;;  %1848 = vmatpush3.msra.mxu1 %v1385_v54 }
 0x304   : > { %1817 = vmatmul.mubr.f32.vlgmr.msra.gmra.mxu0 %v1058_v55  ;;  %1849 = vmatprep.subr.mxu1 %v1960_v32 }
 0x305   : > { %1850 = vmatpush3.msra.mxu1 %v1384_v56  ;;  %1851 = vmatprep.mubr.msk.f32.mxu1 %vm1961_vm1, %v1960_v32 }
 0x306   : > { %1852 = vmatmul.mubr.f32.vlgmr.msra.gmra.mxu1 %v1148_v57 }
 0x3a4   : > { %v945_v58 = vpop.f32.mrf.mxu0 }
 0x3a5   : > { %v949_v63 = vadd.f32 %v945_v58, %v862_v62 }
 0x3a6   : > { %v1748_v59 = vpop.f32.mrf.mxu0  ;;  %v1036_v60 = vpop.f32.mrf.mxu1 }
 0x3a7   : > { %v1040_v0 = vadd.f32 %v1036_v60, %v949_v63 }
 0x3a8   : > { %v1783_v61 = vpop.f32.mrf.mxu1 }
 0x3c4   : > { %v1126_v1 = vpop.f32.mrf.mxu0 }
 0x3c5   : > { %v1130_v2 = vadd.f32 %v1126_v1, %v1040_v0 }
 0x3c6   : > { %v1818_v3 = vpop.f32.mrf.mxu0  ;;  %v1216_v32 = vpop.f32.mrf.mxu1 }
 0x3c7   : > { %v1220_v4 = vadd.f32 %v1216_v32, %v1130_v2 }
 0x3c8   : > { %v1853_v5 = vpop.f32.mrf.mxu1 }
 0x3c9   : > { %1222 = vst.msk [vmem:[%s270_s22] sm:$0x1] %vm1221_vm2, %v1220_v4 }
 0x3ca   : > { %1911 = shalt.err (!%p1908_p3)
}
 0x3cb   : > { %s1912_s15 = scalar_lea.hbm %s2628_s9, 16  ;;  %s1916_s19 = scalar_lea.hbm %s2670_s7, 32 }
 0x3cc   : > { %p1913_p4 = scmp.ne.s32.totalorder %s2628_s9, %s1912_s15  ;;  %p1917_p9 = scmp.lt.s32.totalorder %s2628_s9, %s2670_s7 }
 0x3cd   : > { %p1918_p10 = scmp.lt.s32.totalorder %s1916_s19, %s1912_s15 }
 0x3ce   : > { %p1914_p7 = pnand %p1913_p4, %p2043_p5 }
 0x3cf   : > { %p1919_p11 = por %p1918_p10, %p1917_p9 }
 0x3d0   : > { %p1915_p8 = pneg %p1914_p7 }
 0x3d2   : > { %p1920_p12 = pnand %p1919_p11, %p1915_p8 }
 0x3d4   : > { %1923 = shalt.err (!%p1920_p12)
}
 0x3d5   : > { %1855 = dma.vmem_to_hbm [thread:$0]  (%p2043_p5), %s1237_s20, 16, %s2628_s9, %s1224_s13  }
 0x3d6 PF: > { %p1861_p13 = scmp.ge.s32.totalorder %s1958_s27, 2  ;;  %s1248_s23 = sand.u32 1, %s1946_s24  }
 0x3d7   : > { %s1249_s29 = scalar_lea.sflag [#allocation6], %s1248_s23 }
 0x3d8   : > { %p1858_p0 = pnand %p1861_p13, %p2047_p6 }
 0x3da   : > { %p1859_p1 = pneg %p1858_p0 }
 0x3dc   : > { %1941 = dma.done.wait (%p1859_p1), %s1249_s29, 16  }
 0x3dd   : > { %1943 = vsyncadd (%p1859_p1), %s1249_s29, 4294967280  ;;  %p17_p2 = scmp.ge.s32.totalorder %s2030_s30, 4   ;;  %s2673_s24 = smov %s1950_s25 }
 0x3de   : > { %s2674_s25 = smov %s1954_s26  ;;  %s2675_s26 = smov %s2041_s10 }
 0x3df   : > { %s2676_s27 = smov %s2030_s30  ;;  %19 = sbr.rel (!%p17_p2) target bundleno = 3 (0x3), region = 92 }
 0x3e4   :  { %1253 = vsyncpa [#allocation6], 1 }
 0x3e5   :  { %1255 = vsyncpa [#allocation6 + $0x1], 1 }

</bundles_post_ra>
